<compile_context>
chip_gen: v6e
topology: v6e:2x2x1
jax: 0.10.0
libtpu: 0.0.40
codegen_flags: <defaults>
</compile_context>

<pallas_src>
import math

import jax
import jax.numpy as jnp
import numpy as np
from jax.experimental import pallas as pl
from jax.experimental.pallas import tpu as pltpu  # noqa: F401  (kept for TPU namespace)


# ---------------------------------------------------------------------------
# small model config (ViT-L/14 scaled down, synthetic weights)
# ---------------------------------------------------------------------------
B = 2            # batch
C = 3            # image channels
IMG = 16         # spatial resolution
PATCH = 8        # patch size      -> grid = 2, Tp = 4 patch tokens
D = 32           # transformer width
HEADS = 4        # attention heads
DH = D // HEADS  # head dim = 8
LAYERS = 2       # transformer depth
MLP = 4 * D      # MLP hidden (=128)
EMBED = 16       # output embedding dim (proj)
GRID = IMG // PATCH
TP = GRID * GRID
T = TP + 1       # + CLS token
BT = B * T       # 10 joint tokens (CLS rows first, then patch rows)
HBT = HEADS * BT  # 40 head-stacked rows
CPP = C * PATCH * PATCH
LN_EPS = 1e-5

# packed small-vector table layout (rows of the (NV, D) table)
R_LN_PRE_W, R_LN_PRE_B, R_LN_POST_W, R_LN_POST_B = 0, 1, 2, 3
VBASE = 4
VROWS_PER_LAYER = 9
(V_LN1_W, V_LN1_B, V_BQ, V_BK, V_BV, V_BO, V_LN2_W, V_LN2_B, V_B2) = range(9)
NV = VBASE + LAYERS * VROWS_PER_LAYER


# ---------------------------------------------------------------------------
# in-kernel helpers (all f32 VPU/EUP math)
# ---------------------------------------------------------------------------
def _layernorm(x, w, b, eps=LN_EPS):
    mu = jnp.mean(x, axis=-1, keepdims=True)
    var = jnp.mean((x - mu) ** 2, axis=-1, keepdims=True)
    return (x - mu) * jax.lax.rsqrt(var + eps) * w + b


def _quick_gelu(x):
    return x * jax.nn.sigmoid(1.702 * x)


# ---------------------------------------------------------------------------
# single fused kernel: patch embed + pre + LAYERS transformer blocks + head
# ---------------------------------------------------------------------------
def clip_fused_kernel(patches_ref, w_patch_ref, embed_ref, vec_ref, b1_ref,
                      mask_ref, hmask_ref, w_attn_ref, w1_ref, w2_ref,
                      proj_ref, o_ref):
    bf16 = jnp.bfloat16

    def vec(r):                       # (1, D) f32 row of the packed table
        return vec_ref[r:r + 1, :]

    # ---- patch embedding: CLS rows are zero rows of the patch matrix, so a
    # single matmul + single add assembles all BT tokens (CLS rows come only
    # from the additive table = cls + pos[0]). ----
    emb = jnp.dot(patches_ref[...].astype(bf16), w_patch_ref[...],
                  preferred_element_type=jnp.float32)            # (BT, D)
    x = _layernorm(emb + embed_ref[...], vec(R_LN_PRE_W), vec(R_LN_PRE_B))

    mask = mask_ref[...]      # (HBT, HBT) combined head+image additive mask
    hmask = hmask_ref[...]    # (HBT, D)   head column 0/1 mask

    # ---- transformer layers (static unroll) ----
    for l in range(LAYERS):
        base = VBASE + VROWS_PER_LAYER * l

        # -- attention: all heads stacked along sublanes (HBT rows) --
        y = _layernorm(x, vec(base + V_LN1_W), vec(base + V_LN1_B))
        y4 = jnp.concatenate([y] * HEADS, axis=0).astype(bf16)   # (HBT, D)
        q4 = (jnp.dot(y4, w_attn_ref[4 * l + 0],
                      preferred_element_type=jnp.float32)
              + vec(base + V_BQ)) * hmask                        # scale folded
        k4 = (jnp.dot(y4, w_attn_ref[4 * l + 1],
                      preferred_element_type=jnp.float32)
              + vec(base + V_BK))
        v4 = (jnp.dot(y4, w_attn_ref[4 * l + 2],
                      preferred_element_type=jnp.float32)
              + vec(base + V_BV)) * hmask

        s = jax.lax.dot_general(q4.astype(bf16), k4.astype(bf16),
                                (((1,), (1,)), ((), ())),
                                preferred_element_type=jnp.float32)  # (HBT,HBT)
        s = s + mask
        s = s - jnp.max(s, axis=-1, keepdims=True)
        p = jnp.exp(s)
        p = p * pl.reciprocal(jnp.sum(p, axis=-1, keepdims=True), approx=True)

        o4 = jnp.dot(p.astype(bf16), v4.astype(bf16),
                     preferred_element_type=jnp.float32)             # (HBT, D)
        # "concat heads": row blocks have disjoint column support -> sum them
        o = o4[0:BT, :]
        for h in range(1, HEADS):
            o = o + o4[h * BT:(h + 1) * BT, :]                       # (BT, D)

        x = x + jnp.dot(o.astype(bf16), w_attn_ref[4 * l + 3],
                        preferred_element_type=jnp.float32) + vec(base + V_BO)

        # -- MLP with QuickGELU --
        y2 = _layernorm(x, vec(base + V_LN2_W), vec(base + V_LN2_B))
        h1 = jnp.dot(y2.astype(bf16), w1_ref[l],
                     preferred_element_type=jnp.float32) + b1_ref[l:l + 1, :]
        h1 = _quick_gelu(h1)
        x = x + jnp.dot(h1.astype(bf16), w2_ref[l],
                        preferred_element_type=jnp.float32) + vec(base + V_B2)

    # ---- ln_post on the B CLS tokens (rows 0..B-1) + output projection ----
    y_cls = _layernorm(x[0:B, :], vec(R_LN_POST_W), vec(R_LN_POST_B))
    o_ref[...] = jnp.dot(y_cls.astype(bf16), proj_ref[...],
                         preferred_element_type=jnp.float32)


def fused_forward(patches_pad, kp):
    inputs = (patches_pad, kp["w_patch"], kp["embed_add"], kp["vec32"],
              kp["b1s"], kp["mask40"], kp["head_mask"], kp["w_attn"],
              kp["w1"], kp["w2"], kp["proj"])
    flops = 2 * (BT * CPP * D
                 + LAYERS * (3 * HBT * D * D + 2 * HBT * HBT * D
                             + BT * D * D + 2 * BT * D * MLP)
                 + B * D * EMBED)
    transcendentals = LAYERS * (HBT * HBT + BT * MLP)
    bytes_accessed = sum(int(np.prod(a.shape)) * a.dtype.itemsize
                         for a in inputs) + B * EMBED * 4
    return pl.pallas_call(
        clip_fused_kernel,
        out_shape=jax.ShapeDtypeStruct((B, EMBED), jnp.float32),
        cost_estimate=pl.CostEstimate(flops=flops,
                                      transcendentals=transcendentals,
                                      bytes_accessed=bytes_accessed),
    )(*inputs)


# ---------------------------------------------------------------------------
# parameter construction (deterministic, synthetic) — PyTorch-style layout
# ---------------------------------------------------------------------------
def make_params(key):
    ks = iter(jax.random.split(key, 64))

    def nrm(shape, s=0.02):
        return jax.random.normal(next(ks), shape, jnp.float32) * s

    p = {
        "conv_w": nrm((D, C, PATCH, PATCH)),        # conv1 weight (no bias)
        "cls": nrm((1, D)),                         # class embedding
        "pos": nrm((T, D)),                         # positional embedding
        "ln_pre_w": jnp.ones((1, D), jnp.float32),
        "ln_pre_b": jnp.zeros((1, D), jnp.float32),
        "ln_post_w": jnp.ones((1, D), jnp.float32),
        "ln_post_b": jnp.zeros((1, D), jnp.float32),
        "proj": nrm((D, EMBED)),
        "layers": [],
    }
    for _ in range(LAYERS):
        p["layers"].append((
            jnp.ones((1, D), jnp.float32),   # ln1_w
            jnp.zeros((1, D), jnp.float32),  # ln1_b
            nrm((D, 3 * D)),                 # wqkv
            nrm((1, 3 * D)),                 # bqkv
            nrm((D, D)),                     # wo
            nrm((1, D)),                     # bo
            jnp.ones((1, D), jnp.float32),   # ln2_w
            jnp.zeros((1, D), jnp.float32),  # ln2_b
            nrm((D, MLP)),                   # w1
            nrm((1, MLP)),                   # b1
            nrm((MLP, D)),                   # w2
            nrm((1, D)),                     # b2
        ))
    return p


def prepare_kernel_params(p):
    """One-time host repack: fused/packed weights, scale folding, reordered
    token tables, combined head+image mask, head column mask."""
    scale = 1.0 / math.sqrt(DH)

    rows = [p["ln_pre_w"], p["ln_pre_b"], p["ln_post_w"], p["ln_post_b"]]
    b1_rows, w_attn, w1s, w2s = [], [], [], []
    for (l1w, l1b, wqkv, bqkv, wo, bo, l2w, l2b, w1, b1, w2, b2) in p["layers"]:
        wq = wqkv[:, :D] * scale                     # scale folded into Q
        wk = wqkv[:, D:2 * D]
        wv = wqkv[:, 2 * D:]
        bq = bqkv[:, :D] * scale
        bk = bqkv[:, D:2 * D]
        bv = bqkv[:, 2 * D:]
        rows += [l1w, l1b, bq, bk, bv, bo, l2w, l2b, b2]
        b1_rows.append(b1)
        w_attn += [wq, wk, wv, wo]
        w1s.append(w1)
        w2s.append(w2)

    vec32 = jnp.concatenate(rows, axis=0)            # (NV, D) f32
    b1s = jnp.concatenate(b1_rows, axis=0)           # (L, MLP) f32

    # token order: B CLS rows first, then all patch rows (image-contiguous)
    cls_row = p["cls"] + p["pos"][0:1, :]
    embed_add = jnp.concatenate(
        [jnp.tile(cls_row, (B, 1)), jnp.tile(p["pos"][1:, :], (B, 1))], axis=0)

    # combined head + image block-diagonal additive mask (HBT, HBT)
    tok = np.arange(BT)
    img = np.where(tok < B, tok, (tok - B) // TP)
    img = np.tile(img, HEADS)
    head = np.repeat(np.arange(HEADS), BT)
    valid = (img[:, None] == img[None, :]) & (head[:, None] == head[None, :])
    mask40 = np.where(valid, 0.0, -1e30).astype(np.float32)

    # head column mask (HBT, D): row block h owns columns [h*DH, (h+1)*DH)
    hmask = (np.repeat(np.arange(HEADS), BT)[:, None] ==
             (np.arange(D) // DH)[None, :]).astype(np.float32)

    return {
        "w_patch": p["conv_w"].reshape(D, CPP).T.astype(jnp.bfloat16),  # (CPP,D)
        "embed_add": embed_add.astype(jnp.float32),                     # (BT,D)
        "vec32": vec32.astype(jnp.float32),                             # (NV,D)
        "b1s": b1s.astype(jnp.float32),                                 # (L,MLP)
        "mask40": jnp.asarray(mask40),                                  # (HBT,HBT)
        "head_mask": jnp.asarray(hmask),                                # (HBT,D)
        "w_attn": jnp.stack(w_attn).astype(jnp.bfloat16),               # (4L,D,D)
        "w1": jnp.stack(w1s).astype(jnp.bfloat16),                      # (L,D,MLP)
        "w2": jnp.stack(w2s).astype(jnp.bfloat16),                      # (L,MLP,D)
        "proj": p["proj"].astype(jnp.bfloat16),                         # (D,EMBED)
    }


# ---------------------------------------------------------------------------
# full forward  (== ClipWrapper.forward -> model.visual(imgs))
# ---------------------------------------------------------------------------
def extract_patches(img):
    # NCHW -> [B, Tp, C*P*P], patch vector ordered (c, i, j) to match
    # conv_w.reshape(D, C*P*P)
    x = img.reshape(B, C, GRID, PATCH, GRID, PATCH)
    x = x.transpose(0, 2, 4, 1, 3, 5)                 # [B, gh, gw, C, P, P]
    return x.reshape(B, TP, CPP)


@jax.jit
def clip_visual_forward(img, kparams):
    patches = extract_patches(img.astype(jnp.float32)).reshape(B * TP, CPP)
    # B zero rows up front: CLS tokens come only from the additive table
    patches_pad = jnp.concatenate(
        [jnp.zeros((B, CPP), jnp.float32), patches], axis=0)     # (BT, CPP)
    return fused_forward(patches_pad, kparams)        # single Pallas launch


# ---------------------------------------------------------------------------
# pure-JAX reference (for correctness check)
# ---------------------------------------------------------------------------
def reference_forward(img, params):
    def ln(x, w, b):
        mu = jnp.mean(x, -1, keepdims=True)
        var = jnp.mean((x - mu) ** 2, -1, keepdims=True)
        return (x - mu) * jax.lax.rsqrt(var + LN_EPS) * w + b

    patches = extract_patches(img.astype(jnp.float32))
    w_patch = params["conv_w"].reshape(D, CPP).T
    x = patches @ w_patch                                          # [B,Tp,D]
    cls = jnp.broadcast_to(params["cls"][None], (B, 1, D))
    x = jnp.concatenate([cls, x], axis=1) + params["pos"][None]
    x = ln(x, params["ln_pre_w"], params["ln_pre_b"])
    for (l1w, l1b, wqkv, bqkv, wo, bo, l2w, l2b, w1, b1, w2, b2) in params["layers"]:
        y = ln(x, l1w, l1b)
        qkv = y @ wqkv + bqkv
        q, k, v = qkv[..., :D], qkv[..., D:2 * D], qkv[..., 2 * D:]
        q = q.reshape(B, T, HEADS, DH).transpose(0, 2, 1, 3)
        k = k.reshape(B, T, HEADS, DH).transpose(0, 2, 1, 3)
        v = v.reshape(B, T, HEADS, DH).transpose(0, 2, 1, 3)
        s = jnp.einsum("bhqd,bhkd->bhqk", q, k) / math.sqrt(DH)
        p = jax.nn.softmax(s, axis=-1)
        a = jnp.einsum("bhqk,bhkd->bhqd", p, v).transpose(0, 2, 1, 3)
        a = a.reshape(B, T, D) @ wo + bo
        x = x + a
        y2 = ln(x, l2w, l2b)
        h1 = y2 @ w1 + b1
        h1 = h1 * jax.nn.sigmoid(1.702 * h1)
        x = x + h1 @ w2 + b2
    x_cls = ln(x[:, 0, :], params["ln_post_w"], params["ln_post_b"])
    return x_cls @ params["proj"]


# ---------------------------------------------------------------------------
if __name__ == "__main__":
    key = jax.random.PRNGKey(0)
    k_img, k_par = jax.random.split(key)
    imgs = jax.random.normal(k_img, (B, C, IMG, IMG), jnp.float32)  # NCHW
    params = make_params(k_par)
    kparams = prepare_kernel_params(params)          # one-time host repack

    out = clip_visual_forward(imgs, kparams)
    out = jax.block_until_ready(out)

    ref = jax.block_until_ready(reference_forward(imgs, params))
    assert out.shape == (B, EMBED), out.shape
    np.testing.assert_allclose(np.asarray(out), np.asarray(ref),
                               rtol=1e-2, atol=1e-2)

    print("KERNEL_OK")
</pallas_src>

<mosaic_0001>
module attributes {stable_mosaic.version = 11 : i64} {
  func.func @clip_fused_kernel(%arg0: memref<10x192xf32, #tpu.memory_space<vmem>>, %arg1: memref<192x32xbf16, #tpu.memory_space<vmem>>, %arg2: memref<10x32xf32, #tpu.memory_space<vmem>>, %arg3: memref<22x32xf32, #tpu.memory_space<vmem>>, %arg4: memref<2x128xf32, #tpu.memory_space<vmem>>, %arg5: memref<40x40xf32, #tpu.memory_space<vmem>>, %arg6: memref<40x32xf32, #tpu.memory_space<vmem>>, %arg7: memref<8x32x32xbf16, #tpu.memory_space<vmem>>, %arg8: memref<2x32x128xbf16, #tpu.memory_space<vmem>>, %arg9: memref<2x128x32xbf16, #tpu.memory_space<vmem>>, %arg10: memref<32x16xbf16, #tpu.memory_space<vmem>>, %arg11: memref<2x16xf32, #tpu.memory_space<vmem>>) attributes {dimension_semantics = [], scalar_prefetch = 0 : i64, scratch_operands = 0 : i64, tpu.core_type = #tpu.core_type<tc>} {
    %c0 = arith.constant 0 : index
    %c0_0 = arith.constant 0 : index
    %0 = vector.load %arg0[%c0, %c0_0] : memref<10x192xf32, #tpu.memory_space<vmem>>, vector<10x192xf32>
    %1 = arith.truncf %0 : vector<10x192xf32> to vector<10x192xbf16>
    %c0_1 = arith.constant 0 : index
    %c0_2 = arith.constant 0 : index
    %2 = vector.load %arg1[%c0_1, %c0_2] : memref<192x32xbf16, #tpu.memory_space<vmem>>, vector<192x32xbf16>
    %cst = arith.constant dense<0.000000e+00> : vector<10x32xf32>
    %3 = tpu.matmul %1, %2, %cst {dimension_numbers = #tpu.dot_dimension_numbers<[1], [0], [0], [1], [0, 0, 1, 1], [], []>} : vector<10x192xbf16>, vector<192x32xbf16>, vector<10x32xf32> -> vector<10x32xf32>
    %c0_3 = arith.constant 0 : index
    %c0_4 = arith.constant 0 : index
    %4 = vector.load %arg2[%c0_3, %c0_4] : memref<10x32xf32, #tpu.memory_space<vmem>>, vector<10x32xf32>
    %5 = arith.addf %3, %4 : vector<10x32xf32>
    %c0_5 = arith.constant 0 : index
    %c0_6 = arith.constant 0 : index
    %6 = vector.load %arg3[%c0_5, %c0_6] : memref<22x32xf32, #tpu.memory_space<vmem>>, vector<1x32xf32>
    %c1 = arith.constant 1 : index
    %c0_7 = arith.constant 0 : index
    %7 = vector.load %arg3[%c1, %c0_7] : memref<22x32xf32, #tpu.memory_space<vmem>>, vector<1x32xf32>
    %cst_8 = arith.constant dense<0.000000e+00> : vector<10xf32>
    %8 = vector.multi_reduction <add>, %5, %cst_8 [1] : vector<10x32xf32> to vector<10xf32>
    %9 = vector.shape_cast %8 : vector<10xf32> to vector<10x1xf32>
    %cst_9 = arith.constant 3.200000e+01 : f32
    %10 = vector.broadcast %cst_9 : f32 to vector<10x1xf32>
    %11 = arith.divf %9, %10 : vector<10x1xf32>
    %12 = vector.broadcast %11 : vector<10x1xf32> to vector<10x32xf32>
    %13 = arith.subf %5, %12 : vector<10x32xf32>
    %14 = arith.mulf %13, %13 : vector<10x32xf32>
    %cst_10 = arith.constant dense<0.000000e+00> : vector<10xf32>
    %15 = vector.multi_reduction <add>, %14, %cst_10 [1] : vector<10x32xf32> to vector<10xf32>
    %16 = vector.shape_cast %15 : vector<10xf32> to vector<10x1xf32>
    %cst_11 = arith.constant 3.200000e+01 : f32
    %17 = vector.broadcast %cst_11 : f32 to vector<10x1xf32>
    %18 = arith.divf %16, %17 : vector<10x1xf32>
    %19 = vector.broadcast %11 : vector<10x1xf32> to vector<10x32xf32>
    %20 = arith.subf %5, %19 : vector<10x32xf32>
    %cst_12 = arith.constant 9.99999974E-6 : f32
    %21 = vector.broadcast %cst_12 : f32 to vector<10x1xf32>
    %22 = arith.addf %18, %21 : vector<10x1xf32>
    %23 = math.rsqrt %22 : vector<10x1xf32>
    %24 = vector.broadcast %23 : vector<10x1xf32> to vector<10x32xf32>
    %25 = arith.mulf %20, %24 : vector<10x32xf32>
    %26 = vector.broadcast %6 : vector<1x32xf32> to vector<10x32xf32>
    %27 = arith.mulf %25, %26 : vector<10x32xf32>
    %28 = vector.broadcast %7 : vector<1x32xf32> to vector<10x32xf32>
    %29 = arith.addf %27, %28 : vector<10x32xf32>
    %c0_13 = arith.constant 0 : index
    %c0_14 = arith.constant 0 : index
    %30 = vector.load %arg5[%c0_13, %c0_14] : memref<40x40xf32, #tpu.memory_space<vmem>>, vector<40x40xf32>
    %c0_15 = arith.constant 0 : index
    %c0_16 = arith.constant 0 : index
    %31 = vector.load %arg6[%c0_15, %c0_16] : memref<40x32xf32, #tpu.memory_space<vmem>>, vector<40x32xf32>
    %c4 = arith.constant 4 : index
    %c0_17 = arith.constant 0 : index
    %32 = vector.load %arg3[%c4, %c0_17] : memref<22x32xf32, #tpu.memory_space<vmem>>, vector<1x32xf32>
    %c5 = arith.constant 5 : index
    %c0_18 = arith.constant 0 : index
    %33 = vector.load %arg3[%c5, %c0_18] : memref<22x32xf32, #tpu.memory_space<vmem>>, vector<1x32xf32>
    %cst_19 = arith.constant dense<0.000000e+00> : vector<10xf32>
    %34 = vector.multi_reduction <add>, %29, %cst_19 [1] : vector<10x32xf32> to vector<10xf32>
    %35 = vector.shape_cast %34 : vector<10xf32> to vector<10x1xf32>
    %cst_20 = arith.constant 3.200000e+01 : f32
    %36 = vector.broadcast %cst_20 : f32 to vector<10x1xf32>
    %37 = arith.divf %35, %36 : vector<10x1xf32>
    %38 = vector.broadcast %37 : vector<10x1xf32> to vector<10x32xf32>
    %39 = arith.subf %29, %38 : vector<10x32xf32>
    %40 = arith.mulf %39, %39 : vector<10x32xf32>
    %cst_21 = arith.constant dense<0.000000e+00> : vector<10xf32>
    %41 = vector.multi_reduction <add>, %40, %cst_21 [1] : vector<10x32xf32> to vector<10xf32>
    %42 = vector.shape_cast %41 : vector<10xf32> to vector<10x1xf32>
    %cst_22 = arith.constant 3.200000e+01 : f32
    %43 = vector.broadcast %cst_22 : f32 to vector<10x1xf32>
    %44 = arith.divf %42, %43 : vector<10x1xf32>
    %45 = vector.broadcast %37 : vector<10x1xf32> to vector<10x32xf32>
    %46 = arith.subf %29, %45 : vector<10x32xf32>
    %cst_23 = arith.constant 9.99999974E-6 : f32
    %47 = vector.broadcast %cst_23 : f32 to vector<10x1xf32>
    %48 = arith.addf %44, %47 : vector<10x1xf32>
    %49 = math.rsqrt %48 : vector<10x1xf32>
    %50 = vector.broadcast %49 : vector<10x1xf32> to vector<10x32xf32>
    %51 = arith.mulf %46, %50 : vector<10x32xf32>
    %52 = vector.broadcast %32 : vector<1x32xf32> to vector<10x32xf32>
    %53 = arith.mulf %51, %52 : vector<10x32xf32>
    %54 = vector.broadcast %33 : vector<1x32xf32> to vector<10x32xf32>
    %55 = arith.addf %53, %54 : vector<10x32xf32>
    %56 = tpu.concatenate %55, %55, %55, %55 in 0 : vector<10x32xf32>, vector<10x32xf32>, vector<10x32xf32>, vector<10x32xf32> -> vector<40x32xf32>
    %57 = arith.truncf %56 : vector<40x32xf32> to vector<40x32xbf16>
    %c0_24 = arith.constant 0 : index
    %c0_25 = arith.constant 0 : index
    %c0_26 = arith.constant 0 : index
    %58 = vector.load %arg7[%c0_24, %c0_25, %c0_26] : memref<8x32x32xbf16, #tpu.memory_space<vmem>>, vector<1x32x32xbf16>
    %59 = vector.shape_cast %58 : vector<1x32x32xbf16> to vector<32x32xbf16>
    %cst_27 = arith.constant dense<0.000000e+00> : vector<40x32xf32>
    %60 = tpu.matmul %57, %59, %cst_27 {dimension_numbers = #tpu.dot_dimension_numbers<[1], [0], [0], [1], [0, 0, 1, 1], [], []>} : vector<40x32xbf16>, vector<32x32xbf16>, vector<40x32xf32> -> vector<40x32xf32>
    %c6 = arith.constant 6 : index
    %c0_28 = arith.constant 0 : index
    %61 = vector.load %arg3[%c6, %c0_28] : memref<22x32xf32, #tpu.memory_space<vmem>>, vector<1x32xf32>
    %62 = vector.broadcast %61 : vector<1x32xf32> to vector<40x32xf32>
    %63 = arith.addf %60, %62 : vector<40x32xf32>
    %64 = arith.mulf %63, %31 : vector<40x32xf32>
    %c1_29 = arith.constant 1 : index
    %c0_30 = arith.constant 0 : index
    %c0_31 = arith.constant 0 : index
    %65 = vector.load %arg7[%c1_29, %c0_30, %c0_31] : memref<8x32x32xbf16, #tpu.memory_space<vmem>>, vector<1x32x32xbf16>
    %66 = vector.shape_cast %65 : vector<1x32x32xbf16> to vector<32x32xbf16>
    %cst_32 = arith.constant dense<0.000000e+00> : vector<40x32xf32>
    %67 = tpu.matmul %57, %66, %cst_32 {dimension_numbers = #tpu.dot_dimension_numbers<[1], [0], [0], [1], [0, 0, 1, 1], [], []>} : vector<40x32xbf16>, vector<32x32xbf16>, vector<40x32xf32> -> vector<40x32xf32>
    %c7 = arith.constant 7 : index
    %c0_33 = arith.constant 0 : index
    %68 = vector.load %arg3[%c7, %c0_33] : memref<22x32xf32, #tpu.memory_space<vmem>>, vector<1x32xf32>
    %69 = vector.broadcast %68 : vector<1x32xf32> to vector<40x32xf32>
    %70 = arith.addf %67, %69 : vector<40x32xf32>
    %c2 = arith.constant 2 : index
    %c0_34 = arith.constant 0 : index
    %c0_35 = arith.constant 0 : index
    %71 = vector.load %arg7[%c2, %c0_34, %c0_35] : memref<8x32x32xbf16, #tpu.memory_space<vmem>>, vector<1x32x32xbf16>
    %72 = vector.shape_cast %71 : vector<1x32x32xbf16> to vector<32x32xbf16>
    %cst_36 = arith.constant dense<0.000000e+00> : vector<40x32xf32>
    %73 = tpu.matmul %57, %72, %cst_36 {dimension_numbers = #tpu.dot_dimension_numbers<[1], [0], [0], [1], [0, 0, 1, 1], [], []>} : vector<40x32xbf16>, vector<32x32xbf16>, vector<40x32xf32> -> vector<40x32xf32>
    %c8 = arith.constant 8 : index
    %c0_37 = arith.constant 0 : index
    %74 = vector.load %arg3[%c8, %c0_37] : memref<22x32xf32, #tpu.memory_space<vmem>>, vector<1x32xf32>
    %75 = vector.broadcast %74 : vector<1x32xf32> to vector<40x32xf32>
    %76 = arith.addf %73, %75 : vector<40x32xf32>
    %77 = arith.mulf %76, %31 : vector<40x32xf32>
    %78 = arith.truncf %64 : vector<40x32xf32> to vector<40x32xbf16>
    %79 = arith.truncf %70 : vector<40x32xf32> to vector<40x32xbf16>
    %cst_38 = arith.constant dense<0.000000e+00> : vector<40x40xf32>
    %80 = tpu.matmul %78, %79, %cst_38 {dimension_numbers = #tpu.dot_dimension_numbers<[1], [1], [0], [0], [0, 0, 1, 0], [], []>} : vector<40x32xbf16>, vector<40x32xbf16>, vector<40x40xf32> -> vector<40x40xf32>
    %81 = arith.addf %80, %30 : vector<40x40xf32>
    %cst_39 = arith.constant dense<0xFF800000> : vector<40xf32>
    %82 = vector.multi_reduction <maximumf>, %81, %cst_39 [1] : vector<40x40xf32> to vector<40xf32>
    %83 = vector.shape_cast %82 : vector<40xf32> to vector<40x1xf32>
    %84 = vector.broadcast %83 : vector<40x1xf32> to vector<40x40xf32>
    %85 = arith.subf %81, %84 : vector<40x40xf32>
    %86 = math.exp %85 : vector<40x40xf32>
    %cst_40 = arith.constant dense<0.000000e+00> : vector<40xf32>
    %87 = vector.multi_reduction <add>, %86, %cst_40 [1] : vector<40x40xf32> to vector<40xf32>
    %88 = vector.shape_cast %87 : vector<40xf32> to vector<40x1xf32>
    %89 = tpu.reciprocal %88 {approx = true} : vector<40x1xf32> -> vector<40x1xf32>
    %90 = vector.broadcast %89 : vector<40x1xf32> to vector<40x40xf32>
    %91 = arith.mulf %86, %90 : vector<40x40xf32>
    %92 = arith.truncf %91 : vector<40x40xf32> to vector<40x40xbf16>
    %93 = arith.truncf %77 : vector<40x32xf32> to vector<40x32xbf16>
    %cst_41 = arith.constant dense<0.000000e+00> : vector<40x32xf32>
    %94 = tpu.matmul %92, %93, %cst_41 {dimension_numbers = #tpu.dot_dimension_numbers<[1], [0], [0], [1], [0, 0, 1, 1], [], []>} : vector<40x40xbf16>, vector<40x32xbf16>, vector<40x32xf32> -> vector<40x32xf32>
    %95 = vector.extract_strided_slice %94 {offsets = [0, 0], sizes = [10, 32], strides = [1, 1]} : vector<40x32xf32> to vector<10x32xf32>
    %96 = vector.extract_strided_slice %94 {offsets = [10, 0], sizes = [10, 32], strides = [1, 1]} : vector<40x32xf32> to vector<10x32xf32>
    %97 = arith.addf %95, %96 : vector<10x32xf32>
    %98 = vector.extract_strided_slice %94 {offsets = [20, 0], sizes = [10, 32], strides = [1, 1]} : vector<40x32xf32> to vector<10x32xf32>
    %99 = arith.addf %97, %98 : vector<10x32xf32>
    %100 = vector.extract_strided_slice %94 {offsets = [30, 0], sizes = [10, 32], strides = [1, 1]} : vector<40x32xf32> to vector<10x32xf32>
    %101 = arith.addf %99, %100 : vector<10x32xf32>
    %102 = arith.truncf %101 : vector<10x32xf32> to vector<10x32xbf16>
    %c3 = arith.constant 3 : index
    %c0_42 = arith.constant 0 : index
    %c0_43 = arith.constant 0 : index
    %103 = vector.load %arg7[%c3, %c0_42, %c0_43] : memref<8x32x32xbf16, #tpu.memory_space<vmem>>, vector<1x32x32xbf16>
    %104 = vector.shape_cast %103 : vector<1x32x32xbf16> to vector<32x32xbf16>
    %cst_44 = arith.constant dense<0.000000e+00> : vector<10x32xf32>
    %105 = tpu.matmul %102, %104, %cst_44 {dimension_numbers = #tpu.dot_dimension_numbers<[1], [0], [0], [1], [0, 0, 1, 1], [], []>} : vector<10x32xbf16>, vector<32x32xbf16>, vector<10x32xf32> -> vector<10x32xf32>
    %106 = arith.addf %29, %105 : vector<10x32xf32>
    %c9 = arith.constant 9 : index
    %c0_45 = arith.constant 0 : index
    %107 = vector.load %arg3[%c9, %c0_45] : memref<22x32xf32, #tpu.memory_space<vmem>>, vector<1x32xf32>
    %108 = vector.broadcast %107 : vector<1x32xf32> to vector<10x32xf32>
    %109 = arith.addf %106, %108 : vector<10x32xf32>
    %c10 = arith.constant 10 : index
    %c0_46 = arith.constant 0 : index
    %110 = vector.load %arg3[%c10, %c0_46] : memref<22x32xf32, #tpu.memory_space<vmem>>, vector<1x32xf32>
    %c11 = arith.constant 11 : index
    %c0_47 = arith.constant 0 : index
    %111 = vector.load %arg3[%c11, %c0_47] : memref<22x32xf32, #tpu.memory_space<vmem>>, vector<1x32xf32>
    %cst_48 = arith.constant dense<0.000000e+00> : vector<10xf32>
    %112 = vector.multi_reduction <add>, %109, %cst_48 [1] : vector<10x32xf32> to vector<10xf32>
    %113 = vector.shape_cast %112 : vector<10xf32> to vector<10x1xf32>
    %cst_49 = arith.constant 3.200000e+01 : f32
    %114 = vector.broadcast %cst_49 : f32 to vector<10x1xf32>
    %115 = arith.divf %113, %114 : vector<10x1xf32>
    %116 = vector.broadcast %115 : vector<10x1xf32> to vector<10x32xf32>
    %117 = arith.subf %109, %116 : vector<10x32xf32>
    %118 = arith.mulf %117, %117 : vector<10x32xf32>
    %cst_50 = arith.constant dense<0.000000e+00> : vector<10xf32>
    %119 = vector.multi_reduction <add>, %118, %cst_50 [1] : vector<10x32xf32> to vector<10xf32>
    %120 = vector.shape_cast %119 : vector<10xf32> to vector<10x1xf32>
    %cst_51 = arith.constant 3.200000e+01 : f32
    %121 = vector.broadcast %cst_51 : f32 to vector<10x1xf32>
    %122 = arith.divf %120, %121 : vector<10x1xf32>
    %123 = vector.broadcast %115 : vector<10x1xf32> to vector<10x32xf32>
    %124 = arith.subf %109, %123 : vector<10x32xf32>
    %cst_52 = arith.constant 9.99999974E-6 : f32
    %125 = vector.broadcast %cst_52 : f32 to vector<10x1xf32>
    %126 = arith.addf %122, %125 : vector<10x1xf32>
    %127 = math.rsqrt %126 : vector<10x1xf32>
    %128 = vector.broadcast %127 : vector<10x1xf32> to vector<10x32xf32>
    %129 = arith.mulf %124, %128 : vector<10x32xf32>
    %130 = vector.broadcast %110 : vector<1x32xf32> to vector<10x32xf32>
    %131 = arith.mulf %129, %130 : vector<10x32xf32>
    %132 = vector.broadcast %111 : vector<1x32xf32> to vector<10x32xf32>
    %133 = arith.addf %131, %132 : vector<10x32xf32>
    %134 = arith.truncf %133 : vector<10x32xf32> to vector<10x32xbf16>
    %c0_53 = arith.constant 0 : index
    %c0_54 = arith.constant 0 : index
    %c0_55 = arith.constant 0 : index
    %135 = vector.load %arg8[%c0_53, %c0_54, %c0_55] : memref<2x32x128xbf16, #tpu.memory_space<vmem>>, vector<1x32x128xbf16>
    %136 = vector.shape_cast %135 : vector<1x32x128xbf16> to vector<32x128xbf16>
    %cst_56 = arith.constant dense<0.000000e+00> : vector<10x128xf32>
    %137 = tpu.matmul %134, %136, %cst_56 {dimension_numbers = #tpu.dot_dimension_numbers<[1], [0], [0], [1], [0, 0, 1, 1], [], []>} : vector<10x32xbf16>, vector<32x128xbf16>, vector<10x128xf32> -> vector<10x128xf32>
    %c0_57 = arith.constant 0 : index
    %c0_58 = arith.constant 0 : index
    %138 = vector.load %arg4[%c0_57, %c0_58] : memref<2x128xf32, #tpu.memory_space<vmem>>, vector<1x128xf32>
    %139 = vector.broadcast %138 : vector<1x128xf32> to vector<10x128xf32>
    %140 = arith.addf %137, %139 : vector<10x128xf32>
    %cst_59 = arith.constant 1.702000e+00 : f32
    %141 = vector.broadcast %cst_59 : f32 to vector<10x128xf32>
    %142 = arith.mulf %141, %140 : vector<10x128xf32>
    %143 = arith.negf %142 : vector<10x128xf32>
    %144 = math.exp %143 : vector<10x128xf32>
    %cst_60 = arith.constant 1.000000e+00 : f32
    %145 = vector.broadcast %cst_60 : f32 to vector<10x128xf32>
    %146 = arith.addf %145, %144 : vector<10x128xf32>
    %147 = arith.divf %145, %146 : vector<10x128xf32>
    %148 = arith.mulf %140, %147 : vector<10x128xf32>
    %149 = arith.truncf %148 : vector<10x128xf32> to vector<10x128xbf16>
    %c0_61 = arith.constant 0 : index
    %c0_62 = arith.constant 0 : index
    %c0_63 = arith.constant 0 : index
    %150 = vector.load %arg9[%c0_61, %c0_62, %c0_63] : memref<2x128x32xbf16, #tpu.memory_space<vmem>>, vector<1x128x32xbf16>
    %151 = vector.shape_cast %150 : vector<1x128x32xbf16> to vector<128x32xbf16>
    %cst_64 = arith.constant dense<0.000000e+00> : vector<10x32xf32>
    %152 = tpu.matmul %149, %151, %cst_64 {dimension_numbers = #tpu.dot_dimension_numbers<[1], [0], [0], [1], [0, 0, 1, 1], [], []>} : vector<10x128xbf16>, vector<128x32xbf16>, vector<10x32xf32> -> vector<10x32xf32>
    %153 = arith.addf %109, %152 : vector<10x32xf32>
    %c12 = arith.constant 12 : index
    %c0_65 = arith.constant 0 : index
    %154 = vector.load %arg3[%c12, %c0_65] : memref<22x32xf32, #tpu.memory_space<vmem>>, vector<1x32xf32>
    %155 = vector.broadcast %154 : vector<1x32xf32> to vector<10x32xf32>
    %156 = arith.addf %153, %155 : vector<10x32xf32>
    %c13 = arith.constant 13 : index
    %c0_66 = arith.constant 0 : index
    %157 = vector.load %arg3[%c13, %c0_66] : memref<22x32xf32, #tpu.memory_space<vmem>>, vector<1x32xf32>
    %c14 = arith.constant 14 : index
    %c0_67 = arith.constant 0 : index
    %158 = vector.load %arg3[%c14, %c0_67] : memref<22x32xf32, #tpu.memory_space<vmem>>, vector<1x32xf32>
    %cst_68 = arith.constant dense<0.000000e+00> : vector<10xf32>
    %159 = vector.multi_reduction <add>, %156, %cst_68 [1] : vector<10x32xf32> to vector<10xf32>
    %160 = vector.shape_cast %159 : vector<10xf32> to vector<10x1xf32>
    %cst_69 = arith.constant 3.200000e+01 : f32
    %161 = vector.broadcast %cst_69 : f32 to vector<10x1xf32>
    %162 = arith.divf %160, %161 : vector<10x1xf32>
    %163 = vector.broadcast %162 : vector<10x1xf32> to vector<10x32xf32>
    %164 = arith.subf %156, %163 : vector<10x32xf32>
    %165 = arith.mulf %164, %164 : vector<10x32xf32>
    %cst_70 = arith.constant dense<0.000000e+00> : vector<10xf32>
    %166 = vector.multi_reduction <add>, %165, %cst_70 [1] : vector<10x32xf32> to vector<10xf32>
    %167 = vector.shape_cast %166 : vector<10xf32> to vector<10x1xf32>
    %cst_71 = arith.constant 3.200000e+01 : f32
    %168 = vector.broadcast %cst_71 : f32 to vector<10x1xf32>
    %169 = arith.divf %167, %168 : vector<10x1xf32>
    %170 = vector.broadcast %162 : vector<10x1xf32> to vector<10x32xf32>
    %171 = arith.subf %156, %170 : vector<10x32xf32>
    %cst_72 = arith.constant 9.99999974E-6 : f32
    %172 = vector.broadcast %cst_72 : f32 to vector<10x1xf32>
    %173 = arith.addf %169, %172 : vector<10x1xf32>
    %174 = math.rsqrt %173 : vector<10x1xf32>
    %175 = vector.broadcast %174 : vector<10x1xf32> to vector<10x32xf32>
    %176 = arith.mulf %171, %175 : vector<10x32xf32>
    %177 = vector.broadcast %157 : vector<1x32xf32> to vector<10x32xf32>
    %178 = arith.mulf %176, %177 : vector<10x32xf32>
    %179 = vector.broadcast %158 : vector<1x32xf32> to vector<10x32xf32>
    %180 = arith.addf %178, %179 : vector<10x32xf32>
    %181 = tpu.concatenate %180, %180, %180, %180 in 0 : vector<10x32xf32>, vector<10x32xf32>, vector<10x32xf32>, vector<10x32xf32> -> vector<40x32xf32>
    %182 = arith.truncf %181 : vector<40x32xf32> to vector<40x32xbf16>
    %c4_73 = arith.constant 4 : index
    %c0_74 = arith.constant 0 : index
    %c0_75 = arith.constant 0 : index
    %183 = vector.load %arg7[%c4_73, %c0_74, %c0_75] : memref<8x32x32xbf16, #tpu.memory_space<vmem>>, vector<1x32x32xbf16>
    %184 = vector.shape_cast %183 : vector<1x32x32xbf16> to vector<32x32xbf16>
    %cst_76 = arith.constant dense<0.000000e+00> : vector<40x32xf32>
    %185 = tpu.matmul %182, %184, %cst_76 {dimension_numbers = #tpu.dot_dimension_numbers<[1], [0], [0], [1], [0, 0, 1, 1], [], []>} : vector<40x32xbf16>, vector<32x32xbf16>, vector<40x32xf32> -> vector<40x32xf32>
    %c15 = arith.constant 15 : index
    %c0_77 = arith.constant 0 : index
    %186 = vector.load %arg3[%c15, %c0_77] : memref<22x32xf32, #tpu.memory_space<vmem>>, vector<1x32xf32>
    %187 = vector.broadcast %186 : vector<1x32xf32> to vector<40x32xf32>
    %188 = arith.addf %185, %187 : vector<40x32xf32>
    %189 = arith.mulf %188, %31 : vector<40x32xf32>
    %c5_78 = arith.constant 5 : index
    %c0_79 = arith.constant 0 : index
    %c0_80 = arith.constant 0 : index
    %190 = vector.load %arg7[%c5_78, %c0_79, %c0_80] : memref<8x32x32xbf16, #tpu.memory_space<vmem>>, vector<1x32x32xbf16>
    %191 = vector.shape_cast %190 : vector<1x32x32xbf16> to vector<32x32xbf16>
    %cst_81 = arith.constant dense<0.000000e+00> : vector<40x32xf32>
    %192 = tpu.matmul %182, %191, %cst_81 {dimension_numbers = #tpu.dot_dimension_numbers<[1], [0], [0], [1], [0, 0, 1, 1], [], []>} : vector<40x32xbf16>, vector<32x32xbf16>, vector<40x32xf32> -> vector<40x32xf32>
    %c16 = arith.constant 16 : index
    %c0_82 = arith.constant 0 : index
    %193 = vector.load %arg3[%c16, %c0_82] : memref<22x32xf32, #tpu.memory_space<vmem>>, vector<1x32xf32>
    %194 = vector.broadcast %193 : vector<1x32xf32> to vector<40x32xf32>
    %195 = arith.addf %192, %194 : vector<40x32xf32>
    %c6_83 = arith.constant 6 : index
    %c0_84 = arith.constant 0 : index
    %c0_85 = arith.constant 0 : index
    %196 = vector.load %arg7[%c6_83, %c0_84, %c0_85] : memref<8x32x32xbf16, #tpu.memory_space<vmem>>, vector<1x32x32xbf16>
    %197 = vector.shape_cast %196 : vector<1x32x32xbf16> to vector<32x32xbf16>
    %cst_86 = arith.constant dense<0.000000e+00> : vector<40x32xf32>
    %198 = tpu.matmul %182, %197, %cst_86 {dimension_numbers = #tpu.dot_dimension_numbers<[1], [0], [0], [1], [0, 0, 1, 1], [], []>} : vector<40x32xbf16>, vector<32x32xbf16>, vector<40x32xf32> -> vector<40x32xf32>
    %c17 = arith.constant 17 : index
    %c0_87 = arith.constant 0 : index
    %199 = vector.load %arg3[%c17, %c0_87] : memref<22x32xf32, #tpu.memory_space<vmem>>, vector<1x32xf32>
    %200 = vector.broadcast %199 : vector<1x32xf32> to vector<40x32xf32>
    %201 = arith.addf %198, %200 : vector<40x32xf32>
    %202 = arith.mulf %201, %31 : vector<40x32xf32>
    %203 = arith.truncf %189 : vector<40x32xf32> to vector<40x32xbf16>
    %204 = arith.truncf %195 : vector<40x32xf32> to vector<40x32xbf16>
    %cst_88 = arith.constant dense<0.000000e+00> : vector<40x40xf32>
    %205 = tpu.matmul %203, %204, %cst_88 {dimension_numbers = #tpu.dot_dimension_numbers<[1], [1], [0], [0], [0, 0, 1, 0], [], []>} : vector<40x32xbf16>, vector<40x32xbf16>, vector<40x40xf32> -> vector<40x40xf32>
    %206 = arith.addf %205, %30 : vector<40x40xf32>
    %cst_89 = arith.constant dense<0xFF800000> : vector<40xf32>
    %207 = vector.multi_reduction <maximumf>, %206, %cst_89 [1] : vector<40x40xf32> to vector<40xf32>
    %208 = vector.shape_cast %207 : vector<40xf32> to vector<40x1xf32>
    %209 = vector.broadcast %208 : vector<40x1xf32> to vector<40x40xf32>
    %210 = arith.subf %206, %209 : vector<40x40xf32>
    %211 = math.exp %210 : vector<40x40xf32>
    %cst_90 = arith.constant dense<0.000000e+00> : vector<40xf32>
    %212 = vector.multi_reduction <add>, %211, %cst_90 [1] : vector<40x40xf32> to vector<40xf32>
    %213 = vector.shape_cast %212 : vector<40xf32> to vector<40x1xf32>
    %214 = tpu.reciprocal %213 {approx = true} : vector<40x1xf32> -> vector<40x1xf32>
    %215 = vector.broadcast %214 : vector<40x1xf32> to vector<40x40xf32>
    %216 = arith.mulf %211, %215 : vector<40x40xf32>
    %217 = arith.truncf %216 : vector<40x40xf32> to vector<40x40xbf16>
    %218 = arith.truncf %202 : vector<40x32xf32> to vector<40x32xbf16>
    %cst_91 = arith.constant dense<0.000000e+00> : vector<40x32xf32>
    %219 = tpu.matmul %217, %218, %cst_91 {dimension_numbers = #tpu.dot_dimension_numbers<[1], [0], [0], [1], [0, 0, 1, 1], [], []>} : vector<40x40xbf16>, vector<40x32xbf16>, vector<40x32xf32> -> vector<40x32xf32>
    %220 = vector.extract_strided_slice %219 {offsets = [0, 0], sizes = [10, 32], strides = [1, 1]} : vector<40x32xf32> to vector<10x32xf32>
    %221 = vector.extract_strided_slice %219 {offsets = [10, 0], sizes = [10, 32], strides = [1, 1]} : vector<40x32xf32> to vector<10x32xf32>
    %222 = arith.addf %220, %221 : vector<10x32xf32>
    %223 = vector.extract_strided_slice %219 {offsets = [20, 0], sizes = [10, 32], strides = [1, 1]} : vector<40x32xf32> to vector<10x32xf32>
    %224 = arith.addf %222, %223 : vector<10x32xf32>
    %225 = vector.extract_strided_slice %219 {offsets = [30, 0], sizes = [10, 32], strides = [1, 1]} : vector<40x32xf32> to vector<10x32xf32>
    %226 = arith.addf %224, %225 : vector<10x32xf32>
    %227 = arith.truncf %226 : vector<10x32xf32> to vector<10x32xbf16>
    %c7_92 = arith.constant 7 : index
    %c0_93 = arith.constant 0 : index
    %c0_94 = arith.constant 0 : index
    %228 = vector.load %arg7[%c7_92, %c0_93, %c0_94] : memref<8x32x32xbf16, #tpu.memory_space<vmem>>, vector<1x32x32xbf16>
    %229 = vector.shape_cast %228 : vector<1x32x32xbf16> to vector<32x32xbf16>
    %cst_95 = arith.constant dense<0.000000e+00> : vector<10x32xf32>
    %230 = tpu.matmul %227, %229, %cst_95 {dimension_numbers = #tpu.dot_dimension_numbers<[1], [0], [0], [1], [0, 0, 1, 1], [], []>} : vector<10x32xbf16>, vector<32x32xbf16>, vector<10x32xf32> -> vector<10x32xf32>
    %231 = arith.addf %156, %230 : vector<10x32xf32>
    %c18 = arith.constant 18 : index
    %c0_96 = arith.constant 0 : index
    %232 = vector.load %arg3[%c18, %c0_96] : memref<22x32xf32, #tpu.memory_space<vmem>>, vector<1x32xf32>
    %233 = vector.broadcast %232 : vector<1x32xf32> to vector<10x32xf32>
    %234 = arith.addf %231, %233 : vector<10x32xf32>
    %c19 = arith.constant 19 : index
    %c0_97 = arith.constant 0 : index
    %235 = vector.load %arg3[%c19, %c0_97] : memref<22x32xf32, #tpu.memory_space<vmem>>, vector<1x32xf32>
    %c20 = arith.constant 20 : index
    %c0_98 = arith.constant 0 : index
    %236 = vector.load %arg3[%c20, %c0_98] : memref<22x32xf32, #tpu.memory_space<vmem>>, vector<1x32xf32>
    %cst_99 = arith.constant dense<0.000000e+00> : vector<10xf32>
    %237 = vector.multi_reduction <add>, %234, %cst_99 [1] : vector<10x32xf32> to vector<10xf32>
    %238 = vector.shape_cast %237 : vector<10xf32> to vector<10x1xf32>
    %cst_100 = arith.constant 3.200000e+01 : f32
    %239 = vector.broadcast %cst_100 : f32 to vector<10x1xf32>
    %240 = arith.divf %238, %239 : vector<10x1xf32>
    %241 = vector.broadcast %240 : vector<10x1xf32> to vector<10x32xf32>
    %242 = arith.subf %234, %241 : vector<10x32xf32>
    %243 = arith.mulf %242, %242 : vector<10x32xf32>
    %cst_101 = arith.constant dense<0.000000e+00> : vector<10xf32>
    %244 = vector.multi_reduction <add>, %243, %cst_101 [1] : vector<10x32xf32> to vector<10xf32>
    %245 = vector.shape_cast %244 : vector<10xf32> to vector<10x1xf32>
    %cst_102 = arith.constant 3.200000e+01 : f32
    %246 = vector.broadcast %cst_102 : f32 to vector<10x1xf32>
    %247 = arith.divf %245, %246 : vector<10x1xf32>
    %248 = vector.broadcast %240 : vector<10x1xf32> to vector<10x32xf32>
    %249 = arith.subf %234, %248 : vector<10x32xf32>
    %cst_103 = arith.constant 9.99999974E-6 : f32
    %250 = vector.broadcast %cst_103 : f32 to vector<10x1xf32>
    %251 = arith.addf %247, %250 : vector<10x1xf32>
    %252 = math.rsqrt %251 : vector<10x1xf32>
    %253 = vector.broadcast %252 : vector<10x1xf32> to vector<10x32xf32>
    %254 = arith.mulf %249, %253 : vector<10x32xf32>
    %255 = vector.broadcast %235 : vector<1x32xf32> to vector<10x32xf32>
    %256 = arith.mulf %254, %255 : vector<10x32xf32>
    %257 = vector.broadcast %236 : vector<1x32xf32> to vector<10x32xf32>
    %258 = arith.addf %256, %257 : vector<10x32xf32>
    %259 = arith.truncf %258 : vector<10x32xf32> to vector<10x32xbf16>
    %c1_104 = arith.constant 1 : index
    %c0_105 = arith.constant 0 : index
    %c0_106 = arith.constant 0 : index
    %260 = vector.load %arg8[%c1_104, %c0_105, %c0_106] : memref<2x32x128xbf16, #tpu.memory_space<vmem>>, vector<1x32x128xbf16>
    %261 = vector.shape_cast %260 : vector<1x32x128xbf16> to vector<32x128xbf16>
    %cst_107 = arith.constant dense<0.000000e+00> : vector<10x128xf32>
    %262 = tpu.matmul %259, %261, %cst_107 {dimension_numbers = #tpu.dot_dimension_numbers<[1], [0], [0], [1], [0, 0, 1, 1], [], []>} : vector<10x32xbf16>, vector<32x128xbf16>, vector<10x128xf32> -> vector<10x128xf32>
    %c1_108 = arith.constant 1 : index
    %c0_109 = arith.constant 0 : index
    %263 = vector.load %arg4[%c1_108, %c0_109] : memref<2x128xf32, #tpu.memory_space<vmem>>, vector<1x128xf32>
    %264 = vector.broadcast %263 : vector<1x128xf32> to vector<10x128xf32>
    %265 = arith.addf %262, %264 : vector<10x128xf32>
    %cst_110 = arith.constant 1.702000e+00 : f32
    %266 = vector.broadcast %cst_110 : f32 to vector<10x128xf32>
    %267 = arith.mulf %266, %265 : vector<10x128xf32>
    %268 = arith.negf %267 : vector<10x128xf32>
    %269 = math.exp %268 : vector<10x128xf32>
    %cst_111 = arith.constant 1.000000e+00 : f32
    %270 = vector.broadcast %cst_111 : f32 to vector<10x128xf32>
    %271 = arith.addf %270, %269 : vector<10x128xf32>
    %272 = arith.divf %270, %271 : vector<10x128xf32>
    %273 = arith.mulf %265, %272 : vector<10x128xf32>
    %274 = arith.truncf %273 : vector<10x128xf32> to vector<10x128xbf16>
    %c1_112 = arith.constant 1 : index
    %c0_113 = arith.constant 0 : index
    %c0_114 = arith.constant 0 : index
    %275 = vector.load %arg9[%c1_112, %c0_113, %c0_114] : memref<2x128x32xbf16, #tpu.memory_space<vmem>>, vector<1x128x32xbf16>
    %276 = vector.shape_cast %275 : vector<1x128x32xbf16> to vector<128x32xbf16>
    %cst_115 = arith.constant dense<0.000000e+00> : vector<10x32xf32>
    %277 = tpu.matmul %274, %276, %cst_115 {dimension_numbers = #tpu.dot_dimension_numbers<[1], [0], [0], [1], [0, 0, 1, 1], [], []>} : vector<10x128xbf16>, vector<128x32xbf16>, vector<10x32xf32> -> vector<10x32xf32>
    %278 = arith.addf %234, %277 : vector<10x32xf32>
    %c21 = arith.constant 21 : index
    %c0_116 = arith.constant 0 : index
    %279 = vector.load %arg3[%c21, %c0_116] : memref<22x32xf32, #tpu.memory_space<vmem>>, vector<1x32xf32>
    %280 = vector.broadcast %279 : vector<1x32xf32> to vector<10x32xf32>
    %281 = arith.addf %278, %280 : vector<10x32xf32>
    %282 = vector.extract_strided_slice %281 {offsets = [0, 0], sizes = [2, 32], strides = [1, 1]} : vector<10x32xf32> to vector<2x32xf32>
    %c2_117 = arith.constant 2 : index
    %c0_118 = arith.constant 0 : index
    %283 = vector.load %arg3[%c2_117, %c0_118] : memref<22x32xf32, #tpu.memory_space<vmem>>, vector<1x32xf32>
    %c3_119 = arith.constant 3 : index
    %c0_120 = arith.constant 0 : index
    %284 = vector.load %arg3[%c3_119, %c0_120] : memref<22x32xf32, #tpu.memory_space<vmem>>, vector<1x32xf32>
    %cst_121 = arith.constant dense<0.000000e+00> : vector<2xf32>
    %285 = vector.multi_reduction <add>, %282, %cst_121 [1] : vector<2x32xf32> to vector<2xf32>
    %286 = vector.shape_cast %285 : vector<2xf32> to vector<2x1xf32>
    %cst_122 = arith.constant 3.200000e+01 : f32
    %287 = vector.broadcast %cst_122 : f32 to vector<2x1xf32>
    %288 = arith.divf %286, %287 : vector<2x1xf32>
    %289 = vector.broadcast %288 : vector<2x1xf32> to vector<2x32xf32>
    %290 = arith.subf %282, %289 : vector<2x32xf32>
    %291 = arith.mulf %290, %290 : vector<2x32xf32>
    %cst_123 = arith.constant dense<0.000000e+00> : vector<2xf32>
    %292 = vector.multi_reduction <add>, %291, %cst_123 [1] : vector<2x32xf32> to vector<2xf32>
    %293 = vector.shape_cast %292 : vector<2xf32> to vector<2x1xf32>
    %cst_124 = arith.constant 3.200000e+01 : f32
    %294 = vector.broadcast %cst_124 : f32 to vector<2x1xf32>
    %295 = arith.divf %293, %294 : vector<2x1xf32>
    %296 = vector.broadcast %288 : vector<2x1xf32> to vector<2x32xf32>
    %297 = arith.subf %282, %296 : vector<2x32xf32>
    %cst_125 = arith.constant 9.99999974E-6 : f32
    %298 = vector.broadcast %cst_125 : f32 to vector<2x1xf32>
    %299 = arith.addf %295, %298 : vector<2x1xf32>
    %300 = math.rsqrt %299 : vector<2x1xf32>
    %301 = vector.broadcast %300 : vector<2x1xf32> to vector<2x32xf32>
    %302 = arith.mulf %297, %301 : vector<2x32xf32>
    %303 = vector.broadcast %283 : vector<1x32xf32> to vector<2x32xf32>
    %304 = arith.mulf %302, %303 : vector<2x32xf32>
    %305 = vector.broadcast %284 : vector<1x32xf32> to vector<2x32xf32>
    %306 = arith.addf %304, %305 : vector<2x32xf32>
    %307 = arith.truncf %306 : vector<2x32xf32> to vector<2x32xbf16>
    %c0_126 = arith.constant 0 : index
    %c0_127 = arith.constant 0 : index
    %308 = vector.load %arg10[%c0_126, %c0_127] : memref<32x16xbf16, #tpu.memory_space<vmem>>, vector<32x16xbf16>
    %cst_128 = arith.constant dense<0.000000e+00> : vector<2x16xf32>
    %309 = tpu.matmul %307, %308, %cst_128 {dimension_numbers = #tpu.dot_dimension_numbers<[1], [0], [0], [1], [0, 0, 1, 1], [], []>} : vector<2x32xbf16>, vector<32x16xbf16>, vector<2x16xf32> -> vector<2x16xf32>
    %c0_129 = arith.constant 0 : index
    %c0_130 = arith.constant 0 : index
    %310 = vector.load %arg11[%c0_129, %c0_130] : memref<2x16xf32, #tpu.memory_space<vmem>>, vector<2x16xf32>
    tpu.vector_store %arg11[%c0_129, %c0_130], %309 {strides = array<i32>} : memref<2x16xf32, #tpu.memory_space<vmem>>, vector<2x16xf32>,
    return
  }
}

</mosaic_0001>

<bundles_post_ra>
// kernel: clip_visual_forward.1
= control target key start
LH: loop header
LB: loop body
LE: loop exit
PB: predicated region body
PF: predicated region fallthrough
CT: control target
= control target key end

     0   :  { %v2712_v1 = vmov 0   ;;  %vm144_vm0 = vcmask 523264   ;;  %s3379_s0 = inlined_call_operand.vmem [shape: f32[10,192], index: 0, kind: input, shape index: {}]   ;;  %s3380_s1 = inlined_call_operand.vmem [shape: bf16[192,32], index: 1, kind: input, shape index: {}]   ;;  %s3381_s2 = inlined_call_operand.vmem [shape: f32[10,32], index: 2, kind: input, shape index: {}]   ;;  %s3382_s3 = inlined_call_operand.vmem [shape: f32[22,32], index: 3, kind: input, shape index: {}]   ;;  %s3383_s4 = inlined_call_operand.vmem [shape: f32[2,128], index: 4, kind: input, shape index: {}]   ;;  %s3384_s5 = inlined_call_operand.vmem [shape: f32[40,40], index: 5, kind: input, shape index: {}]   ;;  %s3385_s6 = inlined_call_operand.vmem [shape: f32[40,32], index: 6, kind: input, shape index: {}]   ;;  %s3386_s7 = inlined_call_operand.vmem [shape: bf16[8,32,32], index: 7, kind: input, shape index: {}]   ;;  %s3387_s8 = inlined_call_operand.vmem [shape: bf16[2,32,128], index: 8, kind: input, shape index: {}]   ;;  %s3388_s9 = inlined_call_operand.vmem [shape: bf16[2,128,32], index: 9, kind: input, shape index: {}]   ;;  %s3389_s10 = inlined_call_operand.vmem [shape: bf16[32,16], index: 10, kind: input, shape index: {}]   ;;  %s3390_s11 = inlined_call_operand.hbm [shape: f32[2,16], index: 11, kind: output, shape index: {}]  }
   0x1   :  { %v2562_v0 = vld [vmem:[%s3380_s1 + $0x38] sm:$0xff]   ;;  %148 = vmatprep.subr.bf16.mxu0 %v2712_v1  ;;  %v2563_v2 = vld [vmem:[%s3380_s1 + $0x30] sm:$0xff]   ;;  %v2564_v3 = vld [vmem:[%s3380_s1 + $0x28] sm:$0xff]  }
   0x2   :  { %149 = vmatpush1.bf16.msra.mxu0 %v2562_v0  ;;  %v2565_v4 = vld [vmem:[%s3380_s1 + $0x20] sm:$0xff]   ;;  %v41_v5 = vld [vmem:[%s3379_s0 + $0x8] sm:$0xff]  ;;  %v43_v6 = vld [vmem:[%s3379_s0 + $0x18] sm:$0x3] }
   0x3   :  { %150 = vmatprep.subr.bf16.mxu0 %v2712_v1  ;;  %v2566_v7 = vld [vmem:[%s3380_s1 + $0x18] sm:$0xff]   ;;  %v45_v8 = vpack.c.bf16 %v43_v6, %v41_v5  ;;  %v2567_v9 = vld [vmem:[%s3380_s1 + $0x10] sm:$0xff]   ;;  %v2568_v10 = vld [vmem:[%s3380_s1 + $0x8] sm:$0xff]  }
   0x4   :  { %v2569_v11 = vld [vmem:[%s3380_s1] sm:$0xff]   ;;  %v2570_v12 = vld [vmem:[%s3380_s1 + $0x58] sm:$0xff]   ;;  %v2571_v13 = vld [vmem:[%s3380_s1 + $0x50] sm:$0xff]  }
   0x5   :  { %2073 = vmatprep.mubr.msk.bf16.mxu0 %vm144_vm0, %v45_v8  ;;  %v2572_v14 = vld [vmem:[%s3380_s1 + $0x48] sm:$0xff]  }
   0x6   :  { %151 = vmatpush1.bf16.msra.mxu0 %v2563_v2 }
   0x7   :  { %152 = vmatprep.subr.bf16.mxu0 %v2712_v1 }
   0xa   :  { %153 = vmatpush1.bf16.msra.mxu0 %v2564_v3 }
   0xb   :  { %154 = vmatprep.subr.bf16.mxu0 %v2712_v1 }
   0xe   :  { %155 = vmatpush1.bf16.msra.mxu0 %v2565_v4 }
   0xf   :  { %156 = vmatprep.subr.bf16.mxu0 %v2712_v1 }
  0x12   :  { %157 = vmatpush1.bf16.msra.mxu0 %v2566_v7 }
  0x13   :  { %158 = vmatprep.subr.bf16.mxu0 %v2712_v1 }
  0x16   :  { %159 = vmatpush1.bf16.msra.mxu0 %v2567_v9 }
  0x17   :  { %160 = vmatprep.subr.bf16.mxu0 %v2712_v1 }
  0x1a   :  { %161 = vmatpush1.bf16.msra.mxu0 %v2568_v10 }
  0x1b   :  { %162 = vmatprep.subr.bf16.mxu0 %v2712_v1 }
  0x1e   :  { %163 = vmatpush1.bf16.msra.mxu0 %v2569_v11 }
  0x1f   :  { %172 = vmatprep.subr.bf16.mxu0 %v2712_v1 }
  0x22   :  { %173 = vmatpush2.bf16.msra.mxu0 %v2570_v12 }
  0x23   :  { %174 = vmatprep.subr.bf16.mxu0 %v2712_v1 }
  0x26   :  { %175 = vmatpush2.bf16.msra.mxu0 %v2571_v13 }
  0x27   :  { %176 = vmatprep.subr.bf16.mxu0 %v2712_v1 }
  0x28   :  { %16 = vsyncpa [#allocation3], 0  ;;  %v2573_v15 = vld [vmem:[%s3380_s1 + $0x40] sm:$0xff]   ;;  %v42_v17 = vld [vmem:[%s3379_s0 + $0x10] sm:$0x3]  ;;  %vm191_vm1 = vcmask 261120  }
  0x29   :  { %v40_v16 = vld [vmem:[%s3379_s0] sm:$0xff]  ;;  %v71_v23 = vld [vmem:[%s3381_s2 + $0x8] sm:$0x3]  ;;  %vm195_vm2 = vcmask 254976   ;;  %v2713_v5 = vmov 0.0   ;;  %vm2714_vm3 = vmmov 0  }
  0x2a   :  { %177 = vmatpush2.bf16.msra.mxu0 %v2572_v14  ;;  %v44_v18 = vpack.c.bf16 %v42_v17, %v40_v16  ;;  %v70_v19 = vld [vmem:[%s3381_s2] sm:$0xff]  ;;  %v2574_v3 = vld [vmem:[%s3386_s7 + $0x8] sm:$0xff]   ;;  %2310 = vmatprep.subr.bf16.mxu1 %v2713_v5  ;;  %vm284_vm4 = vcmask 1041408   ;;  %vm290_vm5 = vcmask 1043456   ;;  %vm296_vm6 = vcmask 1045504  }
  0x2b   :  { %178 = vmatprep.subr.bf16.mxu0 %v2712_v1  ;;  %v2074_v46 = vld [vmem:[%s3382_s3] ss:$0 sm:$0xff]  ;;  %v2075_v48 = vld [vmem:[%s3382_s3 + $0x1] ss:$0 sm:$0xff]  ;;  %v2575_v4 = vld [vmem:[%s3386_s7 + $0x28] sm:$0xff]   ;;  %2311 = vmatpush3.bf16.msra.mxu1 %v2574_v3  ;;  %vm640_vm7 = vcmask 326656  }
  0x2c   :  { %v2576_v6 = vld [vmem:[%s3386_s7] sm:$0xff]   ;;  %2312 = vmatprep.subr.bf16.mxu1 %v2713_v5  ;;  %2314 = vmatprep.mubr.msk.bf16.mxu1 %vm2714_vm3, %v2713_v5  ;;  %v2942_v3 = vld [vmem:[%s3385_s6 + $0x18] sm:$0xff]  ;;  %vm2045_vm8 = vcmask 123904  }
  0x2d   :  { %v2577_v7 = vld [vmem:[%s3386_s7 + $0x20] sm:$0xff]  }
  0x2e   :  { %179 = vmatpush2.bf16.msra.mxu0 %v2573_v15  ;;  %v2076_v15 = vld [vmem:[%s3382_s3 + $0x4] ss:$0 sm:$0xff]  ;;  %v2077_v17 = vld [vmem:[%s3382_s3 + $0x5] ss:$0 sm:$0xff] }
  0x2f   :  { %2342 = vmatprep.subr.bf16.mxu0 %v2713_v5  ;;  %2313 = vmatpush3.bf16.msra.mxu1 %v2576_v6 }
  0x30   :  { %2326 = vmatprep.subr.bf16.mxu1 %v2713_v5 }
  0x31   :  { %181 = vmatmul.mubr.bf16.vlgmr.msra.gmra.mxu0 %v44_v18 }
  0x32   :  { %2343 = vmatpush3.bf16.msra.mxu0 %v2575_v4  ;;  %2346 = vmatprep.mubr.msk.bf16.mxu0 %vm2714_vm3, %v2713_v5 }
  0x33   :  { %2344 = vmatprep.subr.bf16.mxu0 %v2713_v5 }
  0x36   :  { %2345 = vmatpush3.bf16.msra.mxu0 %v2577_v7 }
  0x37   :  { %2376 = vmatprep.subr.bf16.mxu0 %v2713_v5 }
  0xf1   :  { %v182_v20 = vpop.f32.mrf.mxu0 }
  0xf2   :  { %v183_v21 = vadd.f32 %v182_v20, %v70_v19 }
  0xf3   :  { %v184_v22 = vpop.f32.mrf.mxu0 }
  0xf4   :  { %v192_v24 = vsel %vm191_vm1, %v183_v21, 0.0 }
  0xf5   :  { %v185_v25 = vpop.f32.mrf.mxu0  ;;  %193 = vadd.xlane.f32.xlu0 %v192_v24 }
  0xf6   :  { %v186_v26 = vadd.f32 %v185_v25, %v71_v23 }
  0xf7   :  { %v187_v27 = vpop.f32.mrf.mxu0 }
  0xf8   :  { %v196_v28 = vsel %vm195_vm2, %v186_v26, 0.0 }
  0xf9   :  { %197 = vadd.xlane.f32.xlu0 %v196_v28 }
 0x17e   :  { %v194_v29 = vpop.xlane.xlu0 %193 }
 0x17f   :  { %v200_v30 = vmul.f32 0.03125, %v194_v29 }
 0x181   :  { %v202_v31 = vsub.f32 %v183_v21, %v200_v30 }
 0x182   :  { %v198_v32 = vpop.xlane.xlu0 %197 }
 0x183   :  { %v201_v33 = vmul.f32 0.03125, %v198_v32  ;;  %v204_v34 = vmul.f32 %v202_v31, %v202_v31 }
 0x185   :  { %v203_v35 = vsub.f32 %v186_v26, %v201_v33  ;;  %v206_v36 = vsel %vm191_vm1, %v204_v34, 0.0  ;;  %v2578_v26 = vld [vmem:[%s3386_s7 + $0x18] sm:$0xff]   ;;  %v2579_v34 = vld [vmem:[%s3386_s7 + $0x10] sm:$0xff]  }
 0x186   :  { %207 = vadd.xlane.f32.xlu1 %v206_v36 }
 0x187   :  { %v205_v37 = vmul.f32 %v203_v35, %v203_v35 }
 0x189   :  { %v209_v38 = vsel %vm195_vm2, %v205_v37, 0.0 }
 0x18a   :  { %210 = vadd.xlane.f32.xlu1 %v209_v38 }
 0x20f   :  { %v208_v39 = vpop.xlane.xlu1 %207 }
 0x210   :  { %v212_v40 = vmul.f32 0.03125, %v208_v39 }
 0x212   :  { %v214_v41 = vadd.f32 1e-05, %v212_v40 }
 0x213   :  { %v211_v42 = vpop.xlane.xlu1 %210 }
 0x214   :  { %2612 = vrsqrt.f32 %v214_v41  ;;  %v213_v43 = vmul.f32 0.03125, %v211_v42 }
 0x216   :  { %v215_v44 = vadd.f32 1e-05, %v213_v43 }
 0x218   :  { %2614 = vrsqrt.f32 %v215_v44 }
 0x221   :  { %v2613_v45 = vpop.eup %2612 }
 0x222   :  { %v218_v47 = vmul.f32 %v2613_v45, %v202_v31 }
 0x224   :  { %v224_v49 = vmul.f32 %v2074_v46, %v218_v47 }
 0x225   :  { %v2615_v50 = vpop.eup %2614 }
 0x226   :  { %v2840_v51 = vadd.f32 %v2075_v48, %v224_v49  ;;  %v219_v52 = vmul.f32 %v2615_v50, %v203_v35 }
 0x228   :  { %v244_v53 = vsel %vm191_vm1, %v2840_v51, 0.0  ;;  %v225_v54 = vmul.f32 %v2074_v46, %v219_v52 }
 0x229   :  { %245 = vadd.xlane.f32.xlu0 %v244_v53 }
 0x22a   :  { %v2844_v55 = vadd.f32 %v2075_v48, %v225_v54 }
 0x22c   :  { %v247_v56 = vsel %vm195_vm2, %v2844_v55, 0.0 }
 0x22d   :  { %248 = vadd.xlane.f32.xlu1 %v247_v56 }
 0x2b2   :  { %v246_v57 = vpop.xlane.xlu0 %245 }
 0x2b3   :  { %v250_v58 = vmul.f32 0.03125, %v246_v57 }
 0x2b5   :  { %v252_v59 = vsub.f32 %v2840_v51, %v250_v58 }
 0x2b6   :  { %v249_v60 = vpop.xlane.xlu1 %248 }
 0x2b7   :  { %v251_v61 = vmul.f32 0.03125, %v249_v60  ;;  %v254_v62 = vmul.f32 %v252_v59, %v252_v59  ;;  %v2935_v60 = vld [vmem:[%s3385_s6 + $0x20] sm:$0xff] }
 0x2b9   :  { %v253_v63 = vsub.f32 %v2844_v55, %v251_v61  ;;  %v256_v0 = vsel %vm191_vm1, %v254_v62, 0.0 }
 0x2ba   :  { %257 = vadd.xlane.f32.xlu0 %v256_v0 }
 0x2bb   :  { %v255_v1 = vmul.f32 %v253_v63, %v253_v63 }
 0x2bd   :  { %v259_v2 = vsel %vm195_vm2, %v255_v1, 0.0 }
 0x2be   :  { %260 = vadd.xlane.f32.xlu1 %v259_v2 }
 0x343   :  { %v258_v8 = vpop.xlane.xlu0 %257 }
 0x344   :  { %v262_v9 = vmul.f32 0.03125, %v258_v8 }
 0x346   :  { %v264_v10 = vadd.f32 1e-05, %v262_v9  ;;  %v2948_v9 = vld [vmem:[%s3385_s6 + $0x10] sm:$0xff] }
 0x347   :  { %v261_v11 = vpop.xlane.xlu1 %260 }
 0x348   :  { %2616 = vrsqrt.f32 %v264_v10  ;;  %v263_v12 = vmul.f32 0.03125, %v261_v11 }
 0x34a   :  { %v265_v13 = vadd.f32 1e-05, %v263_v12 }
 0x34c   :  { %2618 = vrsqrt.f32 %v265_v13 }
 0x355   :  { %v2617_v14 = vpop.eup %2616 }
 0x356   :  { %v268_v16 = vmul.f32 %v2617_v14, %v252_v59  ;;  %v2098_v59 = vld [vmem:[%s3382_s3 + $0x8] ss:$0 sm:$0xff] }
 0x358   :  { %v274_v18 = vmul.f32 %v2076_v15, %v268_v16 }
 0x359   :  { %v2619_v19 = vpop.eup %2618 }
 0x35a   :  { %v269_v20 = vmul.f32 %v2619_v19, %v253_v63  ;;  %v280_v21 = vadd.f32 %v2077_v17, %v274_v18 }
 0x35c   :  { %v275_v22 = vmul.f32 %v2076_v15, %v269_v20  ;;  %v285_v24 = vrot.slane %v280_v21, 6  ;;  %v291_v30 = vrot.slane %v280_v21, 4  ;;  %v297_v33 = vrot.slane %v280_v21, 2  ;;  %v2954_v15 = vld [vmem:[%s3385_s6 + $0x8] sm:$0xff]  ;;  %v2961_v20 = vld [vmem:[%s3385_s6] sm:$0xff] }
 0x35e   :  { %v281_v23 = vadd.f32 %v2077_v17, %v275_v22 }
 0x360   :  { %v302_v25 = vsel %vm284_vm4, %v281_v23, %v285_v24  ;;  %v286_v27 = vrot.slane %v281_v23, 6  ;;  %v292_v28 = vrot.slane %v281_v23, 4  ;;  %v298_v38 = vrot.slane %v281_v23, 2 }
 0x361   :  { %v305_v29 = vpack.c.bf16 %v302_v25, %v280_v21 }
 0x362   :  { %v287_v31 = vsel %vm284_vm4, %v285_v24, %v286_v27  ;;  %v293_v32 = vsel %vm290_vm5, %v291_v30, %v292_v28  ;;  %v299_v39 = vsel %vm296_vm6, %v297_v33, %v298_v38 }
 0x363   :  { %2315 = vmatmul.mubr.msk.bf16.vlgmr.msra.gmra.mxu1 %vm191_vm1, %v305_v29  ;;  %2347 = vmatmul.mubr.msk.bf16.vlgmr.msra.gmra.mxu0 %vm191_vm1, %v305_v29  ;;  %v303_v35 = vsel %vm290_vm5, %v287_v31, %v291_v30  ;;  %v304_v36 = vsel %vm296_vm6, %v293_v32, %v297_v33  ;;  %v307_v40 = vpack.c.bf16 %v299_v39, %v299_v39  ;;  %v2088_v32 = vld [vmem:[%s3382_s3 + $0x7] ss:$0 sm:$0xff] }
 0x364   :  { %2327 = vmatpush3.bf16.msra.mxu1 %v2578_v26  ;;  %2318 = vmatprep.mubr.msk.bf16.mxu1 %vm2714_vm3, %v2713_v5  ;;  %v306_v37 = vpack.c.bf16 %v304_v36, %v303_v35 }
 0x365   :  { %2350 = vmatprep.mubr.msk.bf16.mxu0 %vm2714_vm3, %v2713_v5  ;;  %2328 = vmatprep.subr.bf16.mxu1 %v2713_v5 }
 0x368   :  { %2329 = vmatpush3.bf16.msra.mxu1 %v2579_v34 }
 0x369   :  { %2358 = vmatprep.subr.bf16.mxu1 %v2713_v5 }
 0x36b   :  { %2319 = vmatmul.mubr.msk.bf16.gmra.mxu1 %vm191_vm1, %v306_v37  ;;  %2351 = vmatmul.mubr.msk.bf16.gmra.mxu0 %vm191_vm1, %v306_v37 }
 0x36c   :  { %2322 = vmatprep.mubr.msk.bf16.mxu1 %vm2714_vm3, %v2713_v5  ;;  %2354 = vmatprep.mubr.msk.bf16.mxu0 %vm2714_vm3, %v2713_v5 }
 0x373   :  { %2323 = vmatmul.mubr.msk.bf16.gmra.mxu1 %vm191_vm1, %v307_v40  ;;  %2355 = vmatmul.mubr.msk.bf16.gmra.mxu0 %vm191_vm1, %v307_v40 }
 0x374   :  { %2330 = vmatprep.mubr.msk.bf16.mxu1 %vm2714_vm3, %v2713_v5  ;;  %2382 = vmatprep.mubr.msk.bf16.mxu0 %vm2714_vm3, %v2713_v5 }
 0x37b   :  { %2331 = vmatmul.mubr.msk.bf16.vlgmr.msra.gmra.mxu1 %vm191_vm1, %v305_v29 }
 0x37c   :  { %2334 = vmatprep.mubr.msk.bf16.mxu1 %vm2714_vm3, %v2713_v5 }
 0x383   :  { %2335 = vmatmul.mubr.msk.bf16.gmra.mxu1 %vm191_vm1, %v306_v37 }
 0x384   :  { %2338 = vmatprep.mubr.msk.bf16.mxu1 %vm2714_vm3, %v2713_v5 }
 0x38b   :  { %2339 = vmatmul.mubr.msk.bf16.gmra.mxu1 %vm191_vm1, %v307_v40 }
 0x38c   :  { %2364 = vmatprep.mubr.msk.bf16.mxu1 %vm2714_vm3, %v2713_v5 }
 0x423   :  { %v2921_v41 = vpop.f32.mrf.mxu1  ;;  %v533_v42 = vpop.f32.mrf.mxu0 }
 0x424   :  { %v534_v17 = vadd.f32 %v2098_v59, %v533_v42 }
 0x425   :  { %v2316_v43 = vpop.f32.mrf.mxu1  ;;  %v2348_v44 = vpop.f32.mrf.mxu0 }
 0x426   :  { %v555_v24 = vmul.f32 %v534_v17, %v2961_v20 }
 0x427   :  { %v2923_v45 = vpop.f32.mrf.mxu1  ;;  %v536_v46 = vpop.f32.mrf.mxu0 }
 0x428   :  { %v537_v11 = vadd.f32 %v2098_v59, %v536_v46 }
 0x429   :  { %v2317_v47 = vpop.f32.mrf.mxu1  ;;  %v2349_v48 = vpop.f32.mrf.mxu0 }
 0x42a   :  { %v556_v21 = vmul.f32 %v537_v11, %v2954_v15 }
 0x42b   :  { %v2925_v49 = vpop.f32.mrf.mxu1  ;;  %v541_v50 = vpop.f32.mrf.mxu0 }
 0x42c   :  { %v542_v6 = vadd.f32 %v2098_v59, %v541_v50  ;;  %v699_v26 = vpack.c.bf16 %v556_v21, %v555_v24  ;;  %v2078_v50 = vld [vmem:[%s3382_s3 + $0x6] ss:$0 sm:$0xff] }
 0x42d   :  { %v2320_v52 = vpop.f32.mrf.mxu1  ;;  %v2352_v53 = vpop.f32.mrf.mxu0 }
 0x42e   :  { %v557_v18 = vmul.f32 %v542_v6, %v2948_v9  ;;  %v376_v52 = vadd.f32 %v2078_v50, %v2923_v45  ;;  %v373_v53 = vadd.f32 %v2078_v50, %v2921_v41 }
 0x42f   :  { %v2927_v54 = vpop.f32.mrf.mxu1  ;;  %v544_v56 = vpop.f32.mrf.mxu0 }
 0x430   :  { %v545_v0 = vadd.f32 %v2098_v59, %v544_v56 }
 0x431   :  { %v2321_v57 = vpop.f32.mrf.mxu1  ;;  %v2353_v58 = vpop.f32.mrf.mxu0 }
 0x432   :  { %v558_v12 = vmul.f32 %v545_v0, %v2942_v3  ;;  %v395_v57 = vmul.f32 %v376_v52, %v2954_v15  ;;  %v394_v58 = vmul.f32 %v373_v53, %v2961_v20 }
 0x433   :  { %v2937_v61 = vpop.f32.mrf.mxu1  ;;  %v549_v62 = vpop.f32.mrf.mxu0 }
 0x434   :  { %v550_v63 = vadd.f32 %v2098_v59, %v549_v62  ;;  %v700_v22 = vpack.c.bf16 %v558_v12, %v557_v18  ;;  %v560_v59 = vpack.c.bf16 %v395_v57, %v394_v58  ;;  %v384_v62 = vadd.f32 %v2078_v50, %v2927_v54 }
 0x435   :  { %v2324_v1 = vpop.f32.mrf.mxu1  ;;  %v2356_v2 = vpop.f32.mrf.mxu0 }
 0x436   :  { %v559_v4 = vmul.f32 %v550_v63, %v2935_v60  ;;  %v381_v63 = vadd.f32 %v2078_v50, %v2925_v49  ;;  %v397_v41 = vmul.f32 %v384_v62, %v2942_v3  ;;  %v389_v1 = vadd.f32 %v2078_v50, %v2937_v61  ;;  %v3002_v2 = vld [vmem:[%s3384_s5] sm:$0xff] }
 0x437   :  { %v391_v7 = vpop.f32.mrf.mxu1  ;;  %v552_v8 = vpop.f32.mrf.mxu0 }
 0x438   :  { %v701_v10 = vpack.c.bf16 %v559_v4, %v559_v4  ;;  %v396_v45 = vmul.f32 %v381_v63, %v2948_v9  ;;  %v398_v54 = vmul.f32 %v389_v1, %v2935_v60  ;;  %v3008_v7 = vld [vmem:[%s3384_s5 + $0x8] sm:$0xff] }
 0x439   :  { %v2325_v13 = vpop.f32.mrf.mxu1  ;;  %v2357_v14 = vpop.f32.mrf.mxu0 }
 0x43a   :  { %v712_v16 = vsel %vm290_vm5, %v701_v10, 0  ;;  %v561_v0 = vpack.c.bf16 %v397_v41, %v396_v45  ;;  %v562_v49 = vpack.c.bf16 %v398_v54, %v398_v54  ;;  %v3015_v13 = vld [vmem:[%s3384_s5 + $0x10] sm:$0xff] }
 0x43b   :  { %v455_v19 = vpop.f32.mrf.mxu1  ;;  %2377 = vmatpush3.bf16.msra.mxu0 %v712_v16 }
 0x43c   :  { %2378 = vmatprep.subr.bf16.mxu0 %v2713_v5  ;;  %v456_v47 = vadd.f32 %v2088_v32, %v455_v19  ;;  %v3022_v19 = vld [vmem:[%s3384_s5 + $0x18] sm:$0xff] }
 0x43d   :  { %v2332_v23 = vpop.f32.mrf.mxu1 }
 0x43f   :  { %v458_v25 = vpop.f32.mrf.mxu1  ;;  %2379 = vmatpush3.bf16.msra.mxu0 %v700_v22 }
 0x440   :  { %2380 = vmatprep.subr.bf16.mxu0 %v2713_v5  ;;  %v459_v44 = vadd.f32 %v2088_v32, %v458_v25  ;;  %v3029_v25 = vld [vmem:[%s3384_s5 + $0x20] sm:$0xff] }
 0x441   :  { %v2333_v27 = vpop.f32.mrf.mxu1 }
 0x442   :  { %v563_v48 = vpack.c.bf16 %v459_v44, %v456_v47 }
 0x443   :  { %v463_v28 = vpop.f32.mrf.mxu1  ;;  %2381 = vmatpush3.bf16.msra.mxu0 %v699_v26 }
 0x444   :  { %2410 = vmatprep.subr.bf16.mxu0 %v2713_v5  ;;  %v464_v42 = vadd.f32 %v2088_v32, %v463_v28  ;;  %v576_v56 = vsel %vm191_vm1, %v563_v48, 0 }
 0x445   :  { %v2336_v29 = vpop.f32.mrf.mxu1 }
 0x447   :  { %v466_v30 = vpop.f32.mrf.mxu1 }
 0x448   :  { %v467_v38 = vadd.f32 %v2088_v32, %v466_v30 }
 0x449   :  { %v2337_v31 = vpop.f32.mrf.mxu1 }
 0x44a   :  { %v564_v43 = vpack.c.bf16 %v467_v38, %v464_v42 }
 0x44b   :  { %v471_v33 = vpop.f32.mrf.mxu1 }
 0x44c   :  { %v472_v34 = vadd.f32 %v2088_v32, %v471_v33  ;;  %v579_v46 = vsel %vm191_vm1, %v564_v43, 0 }
 0x44d   :  { %v2340_v35 = vpop.f32.mrf.mxu1 }
 0x44e   :  { %v565_v36 = vpack.c.bf16 %v472_v34, %v472_v34 }
 0x44f   :  { %v474_v37 = vpop.f32.mrf.mxu1 }
 0x450   :  { %v582_v39 = vsel %vm191_vm1, %v565_v36, 0 }
 0x451   :  { %v2341_v40 = vpop.f32.mrf.mxu1  ;;  %2359 = vmatpush3.bf16.xpose.msra.mxu1 %v582_v39 }
 0x452   :  { %2360 = vmatprep.subr.bf16.mxu1 %v2713_v5 }
 0x459   :  { %2361 = vmatpush3.bf16.xpose.msra.mxu1 %v579_v46 }
 0x45a   :  { %2362 = vmatprep.subr.bf16.mxu1 %v2713_v5 }
 0x461   :  { %2363 = vmatpush3.bf16.xpose.msra.mxu1 %v576_v56 }
 0x462   :  { %2394 = vmatprep.subr.bf16.mxu1 %v2713_v5 }
 0x468   :  { %2365 = vmatmul.mubr.msk.bf16.vlgmr.msra.gmra.mxu1 %vm191_vm1, %v560_v59 }
 0x469   :  { %2368 = vmatprep.mubr.msk.bf16.mxu1 %vm2714_vm3, %v2713_v5 }
 0x470   :  { %2369 = vmatmul.mubr.msk.bf16.gmra.mxu1 %vm191_vm1, %v561_v0 }
 0x471   :  { %2372 = vmatprep.mubr.msk.bf16.mxu1 %vm2714_vm3, %v2713_v5 }
 0x478   :  { %2373 = vmatmul.mubr.msk.bf16.gmra.mxu1 %vm191_vm1, %v562_v49 }
 0x479   :  { %2398 = vmatprep.mubr.msk.bf16.mxu1 %vm2714_vm3, %v2713_v5 }
 0x528   :  { %v618_v4 = vpop.f32.mrf.mxu1 }
 0x529   :  { %v619_v61 = vadd.f32 %v618_v4, %v3002_v2 }
 0x52a   :  { %v2366_v6 = vpop.f32.mrf.mxu1 }
 0x52b   :  { %v641_v8 = vsel %vm640_vm7, %v619_v61, -inf }
 0x52c   :  { %642 = vmax.xlane.f32.xlu0 %v641_v8  ;;  %v621_v10 = vpop.f32.mrf.mxu1 }
 0x52d   :  { %v622_v11 = vadd.f32 %v621_v10, %v3008_v7 }
 0x52e   :  { %v2367_v12 = vpop.f32.mrf.mxu1 }
 0x52f   :  { %v644_v14 = vsel %vm640_vm7, %v622_v11, -inf }
 0x530   :  { %645 = vmax.xlane.f32.xlu1 %v644_v14  ;;  %v626_v16 = vpop.f32.mrf.mxu1 }
 0x531   :  { %v627_v17 = vadd.f32 %v626_v16, %v3015_v13 }
 0x532   :  { %v2370_v18 = vpop.f32.mrf.mxu1 }
 0x533   :  { %v647_v21 = vsel %vm640_vm7, %v627_v17, -inf }
 0x534   :  { %648 = vmax.xlane.f32.xlu0 %v647_v21  ;;  %v629_v22 = vpop.f32.mrf.mxu1 }
 0x535   :  { %v630_v23 = vadd.f32 %v629_v22, %v3022_v19 }
 0x536   :  { %v2371_v24 = vpop.f32.mrf.mxu1 }
 0x537   :  { %v650_v26 = vsel %vm640_vm7, %v630_v23, -inf  ;;  %v2580_v24 = vld [vmem:[%s3386_s7 + $0x38] sm:$0xff]  }
 0x538   :  { %651 = vmax.xlane.f32.xlu1 %v650_v26  ;;  %v634_v27 = vpop.f32.mrf.mxu1  ;;  %2395 = vmatpush3.bf16.msra.mxu1 %v2580_v24  ;;  %v2581_v26 = vld [vmem:[%s3386_s7 + $0x30] sm:$0xff]  }
 0x539   :  { %v635_v28 = vadd.f32 %v634_v27, %v3029_v25  ;;  %2396 = vmatprep.subr.bf16.mxu1 %v2713_v5 }
 0x53a   :  { %v2374_v29 = vpop.f32.mrf.mxu1 }
 0x53b   :  { %v653_v30 = vsel %vm640_vm7, %v635_v28, -inf }
 0x53c   :  { %654 = vmax.xlane.f32.xlu0 %v653_v30  ;;  %v637_v31 = vpop.f32.mrf.mxu1  ;;  %2397 = vmatpush3.bf16.msra.mxu1 %v2581_v26 }
 0x53d   :  { %2402 = vmatprep.subr.bf16.mxu1 %v2713_v5 }
 0x53e   :  { %v2375_v32 = vpop.f32.mrf.mxu1 }
 0x5b5   :  { %v643_v33 = vpop.xlane.xlu0 %642 }
 0x5b6   :  { %v656_v34 = vsub.f32 %v619_v61, %v643_v33 }
 0x5b8   :  { %v661_v35 = vmul.f32 1.442695, %v656_v34 }
 0x5b9   :  { %v646_v36 = vpop.xlane.xlu1 %645 }
 0x5ba   :  { %2620 = vpow2.f32 %v661_v35  ;;  %v657_v37 = vsub.f32 %v622_v11, %v646_v36 }
 0x5bc   :  { %v663_v38 = vmul.f32 1.442695, %v657_v37 }
 0x5bd   :  { %v649_v39 = vpop.xlane.xlu0 %648 }
 0x5be   :  { %2622 = vpow2.f32 %v663_v38  ;;  %v658_v40 = vsub.f32 %v627_v17, %v649_v39 }
 0x5c0   :  { %v665_v42 = vmul.f32 1.442695, %v658_v40 }
 0x5c1   :  { %v652_v43 = vpop.xlane.xlu1 %651 }
 0x5c2   :  { %2624 = vpow2.f32 %v665_v42  ;;  %v659_v44 = vsub.f32 %v630_v23, %v652_v43 }
 0x5c4   :  { %v667_v46 = vmul.f32 1.442695, %v659_v44 }
 0x5c5   :  { %v655_v47 = vpop.xlane.xlu0 %654 }
 0x5c6   :  { %2626 = vpow2.f32 %v667_v46  ;;  %v660_v48 = vsub.f32 %v635_v28, %v655_v47 }
 0x5c7   :  { %v2621_v50 = vpop.eup %2620 }
 0x5c8   :  { %v669_v52 = vmul.f32 1.442695, %v660_v48  ;;  %v671_v53 = vsel %vm640_vm7, %v2621_v50, 0.0 }
 0x5c9   :  { %672 = vadd.xlane.f32.xlu1 %v671_v53 }
 0x5ca   :  { %2628 = vpow2.f32 %v669_v52 }
 0x5cb   :  { %v2623_v56 = vpop.eup %2622 }
 0x5cc   :  { %v674_v57 = vsel %vm640_vm7, %v2623_v56, 0.0 }
 0x5cd   :  { %675 = vadd.xlane.f32.xlu0 %v674_v57 }
 0x5cf   :  { %v2625_v58 = vpop.eup %2624 }
 0x5d0   :  { %v677_v59 = vsel %vm640_vm7, %v2625_v58, 0.0 }
 0x5d1   :  { %678 = vadd.xlane.f32.xlu1 %v677_v59 }
 0x5d3   :  { %v2627_v62 = vpop.eup %2626 }
 0x5d4   :  { %v680_v63 = vsel %vm640_vm7, %v2627_v62, 0.0 }
 0x5d5   :  { %681 = vadd.xlane.f32.xlu0 %v680_v63 }
 0x5d7   :  { %v2629_v41 = vpop.eup %2628 }
 0x5d8   :  { %v683_v45 = vsel %vm640_vm7, %v2629_v41, 0.0 }
 0x5d9   :  { %684 = vadd.xlane.f32.xlu1 %v683_v45 }
 0x652   :  { %v673_v0 = vpop.xlane.xlu1 %672 }
 0x653   :  { %2630 = vrcp.f32 %v673_v0 }
 0x656   :  { %v676_v1 = vpop.xlane.xlu0 %675 }
 0x657   :  { %2632 = vrcp.f32 %v676_v1 }
 0x65a   :  { %v679_v54 = vpop.xlane.xlu1 %678 }
 0x65b   :  { %2634 = vrcp.f32 %v679_v54 }
 0x65e   :  { %v682_v49 = vpop.xlane.xlu0 %681 }
 0x65f   :  { %2636 = vrcp.f32 %v682_v49 }
 0x660   :  { %v2631_v4 = vpop.eup %2630 }
 0x661   :  { %v691_v8 = vmul.f32 %v2631_v4, %v2621_v50 }
 0x662   :  { %v685_v61 = vpop.xlane.xlu1 %684 }
 0x663   :  { %2638 = vrcp.f32 %v685_v61 }
 0x664   :  { %v2633_v6 = vpop.eup %2632 }
 0x665   :  { %v692_v10 = vmul.f32 %v2633_v6, %v2623_v56 }
 0x667   :  { %v696_v11 = vpack.c.bf16 %v692_v10, %v691_v8 }
 0x668   :  { %v2635_v12 = vpop.eup %2634 }
 0x669   :  { %2383 = vmatmul.mubr.msk.bf16.vlgmr.msra.gmra.mxu0 %vm640_vm7, %v696_v11  ;;  %v693_v16 = vmul.f32 %v2635_v12, %v2625_v58 }
 0x66a   :  { %2386 = vmatprep.mubr.msk.bf16.mxu0 %vm2714_vm3, %v2713_v5 }
 0x66c   :  { %v2637_v14 = vpop.eup %2636 }
 0x66d   :  { %v694_v17 = vmul.f32 %v2637_v14, %v2627_v62 }
 0x66f   :  { %v697_v18 = vpack.c.bf16 %v694_v17, %v693_v16 }
 0x670   :  { %v2639_v21 = vpop.eup %2638 }
 0x671   :  { %2387 = vmatmul.mubr.msk.bf16.gmra.mxu0 %vm640_vm7, %v697_v18  ;;  %v695_v22 = vmul.f32 %v2639_v21, %v2629_v41  ;;  %v2117_v41 = vld [vmem:[%s3382_s3 + $0x9] ss:$0 sm:$0xff] }
 0x672   :  { %2390 = vmatprep.mubr.msk.bf16.mxu0 %vm2714_vm3, %v2713_v5 }
 0x673   :  { %v698_v23 = vpack.c.bf16 %v695_v22, %v695_v22  ;;  %v2582_v22 = vld [vmem:[%s3387_s8 + $0x8] sm:$0xff]  }
 0x679   :  { %2391 = vmatmul.mubr.msk.bf16.gmra.mxu0 %vm640_vm7, %v698_v23  ;;  %v2583_v23 = vld [vmem:[%s3387_s8] sm:$0xff]  }
 0x67a   :  { %2426 = vmatprep.mubr.msk.bf16.mxu0 %vm2714_vm3, %v2713_v5 }
 0x729   :  { %v748_v27 = vpop.f32.mrf.mxu0 }
 0x72b   :  { %v2384_v28 = vpop.f32.mrf.mxu0 }
 0x72d   :  { %v751_v29 = vpop.f32.mrf.mxu0 }
 0x72e   :  { %v772_v34 = vrot.slane %v751_v29, 2 }
 0x72f   :  { %v2385_v30 = vpop.f32.mrf.mxu0 }
 0x731   :  { %v756_v31 = vpop.f32.mrf.mxu0 }
 0x732   :  { %v773_v32 = vrot.slane %v756_v31, 2  ;;  %v780_v37 = vrot.slane %v756_v31, 4 }
 0x733   :  { %v2388_v33 = vpop.f32.mrf.mxu0 }
 0x734   :  { %v774_v36 = vsel %vm296_vm6, %v772_v34, %v773_v32  ;;  %v778_v40 = vadd.f32 %v773_v32, %v751_v29  ;;  %v2118_v33 = vld [vmem:[%s3382_s3 + $0xa] ss:$0 sm:$0xff] }
 0x735   :  { %v759_v35 = vpop.f32.mrf.mxu0  ;;  %v777_v43 = vadd.f32 %v774_v36, %v748_v27 }
 0x736   :  { %v781_v38 = vrot.slane %v759_v35, 4  ;;  %v788_v47 = vrot.slane %v759_v35, 6 }
 0x737   :  { %v2389_v39 = vpop.f32.mrf.mxu0 }
 0x738   :  { %v782_v42 = vsel %vm290_vm5, %v780_v37, %v781_v38  ;;  %v786_v46 = vadd.f32 %v781_v38, %v778_v40  ;;  %v2119_v37 = vld [vmem:[%s3382_s3 + $0xb] ss:$0 sm:$0xff] }
 0x739   :  { %v764_v44 = vpop.f32.mrf.mxu0  ;;  %v785_v50 = vadd.f32 %v782_v42, %v777_v43  ;;  %v2584_v43 = vld [vmem:[%s3388_s9 + $0x38] sm:$0xff]  }
 0x73a   :  { %v789_v48 = vrot.slane %v764_v44, 6  ;;  %2411 = vmatpush3.bf16.msra.mxu0 %v2584_v43  ;;  %v2585_v44 = vld [vmem:[%s3388_s9 + $0x30] sm:$0xff]  }
 0x73b   :  { %v2392_v52 = vpop.f32.mrf.mxu0  ;;  %2412 = vmatprep.subr.bf16.mxu0 %v2713_v5 }
 0x73c   :  { %v790_v53 = vsel %vm284_vm4, %v788_v47, %v789_v48  ;;  %v794_v56 = vadd.f32 %v789_v48, %v786_v46  ;;  %v2586_v46 = vld [vmem:[%s3388_s9 + $0x28] sm:$0xff]   ;;  %v2587_v47 = vld [vmem:[%s3388_s9 + $0x20] sm:$0xff]   ;;  %v2588_v48 = vld [vmem:[%s3388_s9 + $0x18] sm:$0xff]  }
 0x73d   :  { %v793_v57 = vadd.f32 %v790_v53, %v785_v50  ;;  %v767_v58 = vpop.f32.mrf.mxu0  ;;  %v2589_v50 = vld [vmem:[%s3388_s9 + $0x10] sm:$0xff]   ;;  %v2590_v52 = vld [vmem:[%s3388_s9 + $0x8] sm:$0xff]   ;;  %v2591_v53 = vld [vmem:[%s3388_s9] sm:$0xff]  }
 0x73e   :  { %2413 = vmatpush3.bf16.msra.mxu0 %v2585_v44 }
 0x73f   :  { %v795_v59 = vpack.c.bf16 %v794_v56, %v793_v57  ;;  %v2393_v62 = vpop.f32.mrf.mxu0  ;;  %2414 = vmatprep.subr.bf16.mxu0 %v2713_v5  ;;  %v2120_v56 = vld [vmem:[%s3383_s4] ss:$0 sm:$0xff] }
 0x741   :  { %2399 = vmatmul.mubr.msk.bf16.vlgmr.msra.gmra.mxu1 %vm191_vm1, %v795_v59 }
 0x742   :  { %2406 = vmatprep.mubr.msk.bf16.mxu1 %vm2714_vm3, %v2713_v5  ;;  %2403 = vmatpush3.bf16.msra.mxu1 %v2582_v22 }
 0x743   :  { %2404 = vmatprep.subr.bf16.mxu1 %v2713_v5  ;;  %2415 = vmatpush3.bf16.msra.mxu0 %v2586_v46 }
 0x744   :  { %2416 = vmatprep.subr.bf16.mxu0 %v2713_v5 }
 0x746   :  { %2405 = vmatpush3.bf16.msra.mxu1 %v2583_v23 }
 0x747   :  { %2430 = vmatprep.subr.bf16.mxu1 %v2713_v5  ;;  %2417 = vmatpush3.bf16.msra.mxu0 %v2587_v47 }
 0x748   :  { %2418 = vmatprep.subr.bf16.mxu0 %v2713_v5 }
 0x74b   :  { %2419 = vmatpush3.bf16.msra.mxu0 %v2588_v48 }
 0x74c   :  { %2420 = vmatprep.subr.bf16.mxu0 %v2713_v5 }
 0x74f   :  { %2421 = vmatpush3.bf16.msra.mxu0 %v2589_v50 }
 0x750   :  { %2422 = vmatprep.subr.bf16.mxu0 %v2713_v5 }
 0x753   :  { %2423 = vmatpush3.bf16.msra.mxu0 %v2590_v52 }
 0x754   :  { %2424 = vmatprep.subr.bf16.mxu0 %v2713_v5 }
 0x757   :  { %2425 = vmatpush3.bf16.msra.mxu0 %v2591_v53  ;;  %v2135_v53 = vld [vmem:[%s3382_s3 + $0xd] ss:$0 sm:$0xff] }
 0x758   :  { %2446 = vmatprep.subr.bf16.mxu0 %v2713_v5 }
 0x801   :  { %v850_v63 = vpop.f32.mrf.mxu1 }
 0x802   :  { %v857_v45 = vadd.f32 %v850_v63, %v2840_v51 }
 0x803   :  { %v2400_v0 = vpop.f32.mrf.mxu1 }
 0x804   :  { %v3066_v1 = vadd.f32 %v2117_v41, %v857_v45 }
 0x805   :  { %v853_v54 = vpop.f32.mrf.mxu1 }
 0x806   :  { %v858_v49 = vadd.f32 %v853_v54, %v2844_v55  ;;  %v868_v4 = vsel %vm191_vm1, %v3066_v1, 0.0 }
 0x807   :  { %869 = vadd.xlane.f32.xlu0 %v868_v4  ;;  %v2401_v61 = vpop.f32.mrf.mxu1 }
 0x808   :  { %v3071_v6 = vadd.f32 %v2117_v41, %v858_v49 }
 0x80a   :  { %v871_v8 = vsel %vm195_vm2, %v3071_v6, 0.0 }
 0x80b   :  { %872 = vadd.xlane.f32.xlu1 %v871_v8 }
 0x890   :  { %v870_v10 = vpop.xlane.xlu0 %869 }
 0x891   :  { %v874_v11 = vmul.f32 0.03125, %v870_v10 }
 0x893   :  { %v876_v51 = vsub.f32 %v3066_v1, %v874_v11 }
 0x894   :  { %v873_v12 = vpop.xlane.xlu1 %872 }
 0x895   :  { %v875_v14 = vmul.f32 0.03125, %v873_v12  ;;  %v878_v16 = vmul.f32 %v876_v51, %v876_v51 }
 0x897   :  { %v877_v55 = vsub.f32 %v3071_v6, %v875_v14  ;;  %v880_v17 = vsel %vm191_vm1, %v878_v16, 0.0 }
 0x898   :  { %881 = vadd.xlane.f32.xlu0 %v880_v17  ;;  %v2134_v17 = vld [vmem:[%s3382_s3 + $0xc] ss:$0 sm:$0xff] }
 0x899   :  { %v879_v18 = vmul.f32 %v877_v55, %v877_v55 }
 0x89b   :  { %v883_v21 = vsel %vm195_vm2, %v879_v18, 0.0 }
 0x89c   :  { %884 = vadd.xlane.f32.xlu1 %v883_v21 }
 0x921   :  { %v882_v24 = vpop.xlane.xlu0 %881 }
 0x922   :  { %v886_v26 = vmul.f32 0.03125, %v882_v24 }
 0x924   :  { %v888_v27 = vadd.f32 1e-05, %v886_v26 }
 0x925   :  { %v885_v28 = vpop.xlane.xlu1 %884 }
 0x926   :  { %2640 = vrsqrt.f32 %v888_v27  ;;  %v887_v29 = vmul.f32 0.03125, %v885_v28 }
 0x928   :  { %v889_v30 = vadd.f32 1e-05, %v887_v29 }
 0x92a   :  { %2642 = vrsqrt.f32 %v889_v30 }
 0x933   :  { %v2641_v31 = vpop.eup %2640 }
 0x934   :  { %v892_v32 = vmul.f32 %v2641_v31, %v876_v51 }
 0x936   :  { %v898_v36 = vmul.f32 %v2118_v33, %v892_v32 }
 0x937   :  { %v2643_v34 = vpop.eup %2642 }
 0x938   :  { %v893_v35 = vmul.f32 %v2643_v34, %v877_v55  ;;  %v904_v39 = vadd.f32 %v2119_v37, %v898_v36 }
 0x93a   :  { %v899_v38 = vmul.f32 %v2118_v33, %v893_v35 }
 0x93c   :  { %v905_v40 = vadd.f32 %v2119_v37, %v899_v38  ;;  %v2592_v38 = vld [vmem:[%s3386_s7 + $0x48] sm:$0xff]  }
 0x93e   :  { %v906_v42 = vpack.c.bf16 %v905_v40, %v904_v39  ;;  %v2593_v39 = vld [vmem:[%s3386_s7 + $0x58] sm:$0xff]   ;;  %v2594_v40 = vld [vmem:[%s3386_s7 + $0x40] sm:$0xff]  }
 0x940   :  { %2407 = vmatmul.mubr.msk.bf16.vlgmr.msra.gmra.mxu1 %vm191_vm1, %v906_v42  ;;  %v2595_v42 = vld [vmem:[%s3386_s7 + $0x50] sm:$0xff]  }
 0x941   :  { %2434 = vmatprep.mubr.msk.bf16.mxu1 %vm2714_vm3, %v2713_v5  ;;  %2431 = vmatpush3.bf16.msra.mxu1 %v2592_v38 }
 0x942   :  { %2432 = vmatprep.subr.bf16.mxu1 %v2713_v5 }
 0x945   :  { %2433 = vmatpush3.bf16.msra.mxu1 %v2594_v40  ;;  %v2151_v40 = vld [vmem:[%s3382_s3 + $0x10] ss:$0 sm:$0xff] }
 0x946   :  { %2462 = vmatprep.subr.bf16.mxu1 %v2713_v5 }
 0xa00   :  { %v965_v57 = vpop.f32.mrf.mxu1 }
 0xa01   :  { %v966_v58 = vadd.f32 %v2120_v56, %v965_v57  ;;  %v2136_v57 = vld [vmem:[%s3382_s3 + $0xe] ss:$0 sm:$0xff] }
 0xa02   :  { %v2408_v59 = vpop.f32.mrf.mxu1 }
 0xa03   :  { %v2124_v62 = vmul.f32 -1.702, %v966_v58 }
 0xa04   :  { %v968_v63 = vpop.f32.mrf.mxu1 }
 0xa05   :  { %v976_v41 = vmul.f32 1.442695, %v2124_v62  ;;  %v969_v45 = vadd.f32 %v2120_v56, %v968_v63 }
 0xa06   :  { %v2409_v0 = vpop.f32.mrf.mxu1 }
 0xa07   :  { %2644 = vpow2.f32 %v976_v41  ;;  %v2125_v54 = vmul.f32 -1.702, %v969_v45 }
 0xa09   :  { %v978_v49 = vmul.f32 1.442695, %v2125_v54 }
 0xa0b   :  { %2646 = vpow2.f32 %v978_v49 }
 0xa14   :  { %v2645_v4 = vpop.eup %2644 }
 0xa15   :  { %v980_v61 = vadd.f32 1.0, %v2645_v4 }
 0xa17   :  { %2648 = vrcp.f32 %v980_v61 }
 0xa18   :  { %v2647_v8 = vpop.eup %2646 }
 0xa19   :  { %v981_v10 = vadd.f32 1.0, %v2647_v8 }
 0xa1b   :  { %2650 = vrcp.f32 %v981_v10  ;;  %v2596_v10 = vld [vmem:[%s3386_s7 + $0x68] sm:$0xff]  }
 0xa24   :  { %v2649_v11 = vpop.eup %2648 }
 0xa25   :  { %v986_v12 = vmul.f32 %v2649_v11, %v966_v58 }
 0xa28   :  { %v2651_v51 = vpop.eup %2650 }
 0xa29   :  { %v987_v14 = vmul.f32 %v2651_v51, %v969_v45 }
 0xa2b   :  { %v988_v16 = vpack.c.bf16 %v987_v14, %v986_v12  ;;  %v2597_v14 = vld [vmem:[%s3386_s7 + $0x60] sm:$0xff]  }
 0xa2d   :  { %2427 = vmatmul.mubr.bf16.vlgmr.msra.gmra.mxu0 %v988_v16 }
 0xa2e   :  { %2450 = vmatprep.mubr.msk.bf16.mxu0 %vm2714_vm3, %v2713_v5  ;;  %2447 = vmatpush3.bf16.msra.mxu0 %v2593_v39 }
 0xa2f   :  { %2448 = vmatprep.subr.bf16.mxu0 %v2713_v5 }
 0xa32   :  { %2449 = vmatpush3.bf16.msra.mxu0 %v2595_v42 }
 0xa33   :  { %2478 = vmatprep.subr.bf16.mxu0 %v2713_v5 }
 0xaed   :  { %v1087_v55 = vpop.f32.mrf.mxu0 }
 0xaee   :  { %v1094_v18 = vadd.f32 %v1087_v55, %v3066_v1 }
 0xaef   :  { %v2428_v21 = vpop.f32.mrf.mxu0 }
 0xaf0   :  { %v3137_v22 = vadd.f32 %v2134_v17, %v1094_v18 }
 0xaf1   :  { %v1090_v23 = vpop.f32.mrf.mxu0 }
 0xaf2   :  { %v1095_v24 = vadd.f32 %v1090_v23, %v3071_v6  ;;  %v1105_v26 = vsel %vm191_vm1, %v3137_v22, 0.0 }
 0xaf3   :  { %1106 = vadd.xlane.f32.xlu0 %v1105_v26  ;;  %v2429_v27 = vpop.f32.mrf.mxu0 }
 0xaf4   :  { %v3142_v28 = vadd.f32 %v2134_v17, %v1095_v24 }
 0xaf6   :  { %v1108_v29 = vsel %vm195_vm2, %v3142_v28, 0.0 }
 0xaf7   :  { %1109 = vadd.xlane.f32.xlu1 %v1108_v29 }
 0xb7c   :  { %v1107_v30 = vpop.xlane.xlu0 %1106 }
 0xb7d   :  { %v1111_v31 = vmul.f32 0.03125, %v1107_v30 }
 0xb7f   :  { %v1113_v1 = vsub.f32 %v3137_v22, %v1111_v31 }
 0xb80   :  { %v1110_v32 = vpop.xlane.xlu1 %1109 }
 0xb81   :  { %v1112_v33 = vmul.f32 0.03125, %v1110_v32  ;;  %v1115_v34 = vmul.f32 %v1113_v1, %v1113_v1 }
 0xb83   :  { %v1114_v6 = vsub.f32 %v3142_v28, %v1112_v33  ;;  %v1117_v35 = vsel %vm191_vm1, %v1115_v34, 0.0 }
 0xb84   :  { %1118 = vadd.xlane.f32.xlu0 %v1117_v35 }
 0xb85   :  { %v1116_v36 = vmul.f32 %v1114_v6, %v1114_v6 }
 0xb87   :  { %v1120_v37 = vsel %vm195_vm2, %v1116_v36, 0.0 }
 0xb88   :  { %1121 = vadd.xlane.f32.xlu1 %v1120_v37 }
 0xc0d   :  { %v1119_v43 = vpop.xlane.xlu0 %1118 }
 0xc0e   :  { %v1123_v44 = vmul.f32 0.03125, %v1119_v43 }
 0xc10   :  { %v1125_v46 = vadd.f32 1e-05, %v1123_v44 }
 0xc11   :  { %v1122_v47 = vpop.xlane.xlu1 %1121 }
 0xc12   :  { %2652 = vrsqrt.f32 %v1125_v46  ;;  %v1124_v48 = vmul.f32 0.03125, %v1122_v47 }
 0xc14   :  { %v1126_v50 = vadd.f32 1e-05, %v1124_v48 }
 0xc16   :  { %2654 = vrsqrt.f32 %v1126_v50 }
 0xc1f   :  { %v2653_v52 = vpop.eup %2652 }
 0xc20   :  { %v1129_v56 = vmul.f32 %v2653_v52, %v1113_v1 }
 0xc22   :  { %v1135_v58 = vmul.f32 %v2135_v53, %v1129_v56 }
 0xc23   :  { %v2655_v59 = vpop.eup %2654 }
 0xc24   :  { %v1141_v62 = vadd.f32 %v2136_v57, %v1135_v58  ;;  %v1130_v63 = vmul.f32 %v2655_v59, %v1114_v6 }
 0xc26   :  { %v1136_v41 = vmul.f32 %v2135_v53, %v1130_v63  ;;  %v1145_v0 = vrot.slane %v1141_v62, 6  ;;  %v1150_v8 = vrot.slane %v1141_v62, 4  ;;  %v1155_v12 = vrot.slane %v1141_v62, 2 }
 0xc28   :  { %v1142_v45 = vadd.f32 %v2136_v57, %v1136_v41 }
 0xc2a   :  { %v1160_v54 = vsel %vm284_vm4, %v1142_v45, %v1145_v0  ;;  %v1146_v49 = vrot.slane %v1142_v45, 6  ;;  %v1151_v4 = vrot.slane %v1142_v45, 4  ;;  %v1156_v18 = vrot.slane %v1142_v45, 2 }
 0xc2b   :  { %v1163_v61 = vpack.c.bf16 %v1160_v54, %v1141_v62 }
 0xc2c   :  { %v1147_v11 = vsel %vm284_vm4, %v1145_v0, %v1146_v49  ;;  %v1152_v51 = vsel %vm290_vm5, %v1150_v8, %v1151_v4  ;;  %v1157_v21 = vsel %vm296_vm6, %v1155_v12, %v1156_v18  ;;  %v2161_v18 = vld [vmem:[%s3382_s3 + $0x11] ss:$0 sm:$0xff] }
 0xc2d   :  { %2435 = vmatmul.mubr.msk.bf16.vlgmr.msra.gmra.mxu1 %vm191_vm1, %v1163_v61  ;;  %2451 = vmatmul.mubr.msk.bf16.vlgmr.msra.gmra.mxu0 %vm191_vm1, %v1163_v61  ;;  %v1161_v16 = vsel %vm290_vm5, %v1147_v11, %v1150_v8  ;;  %v1162_v55 = vsel %vm296_vm6, %v1152_v51, %v1155_v12  ;;  %v1165_v23 = vpack.c.bf16 %v1157_v21, %v1157_v21 }
 0xc2e   :  { %2438 = vmatprep.mubr.msk.bf16.mxu1 %vm2714_vm3, %v2713_v5  ;;  %2454 = vmatprep.mubr.msk.bf16.mxu0 %vm2714_vm3, %v2713_v5  ;;  %v1164_v17 = vpack.c.bf16 %v1162_v55, %v1161_v16 }
 0xc2f   :  { %2463 = vmatpush3.bf16.msra.mxu1 %v2596_v10  ;;  %v2141_v10 = vld [vmem:[%s3382_s3 + $0xf] ss:$0 sm:$0xff] }
 0xc30   :  { %2464 = vmatprep.subr.bf16.mxu1 %v2713_v5 }
 0xc33   :  { %2465 = vmatpush3.bf16.msra.mxu1 %v2597_v14 }
 0xc34   :  { %2496 = vmatprep.subr.bf16.mxu1 %v2713_v5 }
 0xc35   :  { %2439 = vmatmul.mubr.msk.bf16.gmra.mxu1 %vm191_vm1, %v1164_v17  ;;  %2455 = vmatmul.mubr.msk.bf16.gmra.mxu0 %vm191_vm1, %v1164_v17 }
 0xc36   :  { %2442 = vmatprep.mubr.msk.bf16.mxu1 %vm2714_vm3, %v2713_v5  ;;  %2458 = vmatprep.mubr.msk.bf16.mxu0 %vm2714_vm3, %v2713_v5 }
 0xc3d   :  { %2443 = vmatmul.mubr.msk.bf16.gmra.mxu1 %vm191_vm1, %v1165_v23  ;;  %2459 = vmatmul.mubr.msk.bf16.gmra.mxu0 %vm191_vm1, %v1165_v23 }
 0xc3e   :  { %2466 = vmatprep.mubr.msk.bf16.mxu1 %vm2714_vm3, %v2713_v5  ;;  %2484 = vmatprep.mubr.msk.bf16.mxu0 %vm2714_vm3, %v2713_v5 }
 0xc45   :  { %2467 = vmatmul.mubr.msk.bf16.vlgmr.msra.gmra.mxu1 %vm191_vm1, %v1163_v61 }
 0xc46   :  { %2470 = vmatprep.mubr.msk.bf16.mxu1 %vm2714_vm3, %v2713_v5 }
 0xc4d   :  { %2471 = vmatmul.mubr.msk.bf16.gmra.mxu1 %vm191_vm1, %v1164_v17 }
 0xc4e   :  { %2474 = vmatprep.mubr.msk.bf16.mxu1 %vm2714_vm3, %v2713_v5 }
 0xc55   :  { %2475 = vmatmul.mubr.msk.bf16.gmra.mxu1 %vm191_vm1, %v1165_v23 }
 0xc56   :  { %2502 = vmatprep.mubr.msk.bf16.mxu1 %vm2714_vm3, %v2713_v5 }
 0xced   :  { %v1231_v24 = vpop.f32.mrf.mxu1  ;;  %v1314_v26 = vpop.f32.mrf.mxu0 }
 0xcee   :  { %v1315_v4 = vadd.f32 %v2151_v40, %v1314_v26  ;;  %v1232_v14 = vadd.f32 %v2141_v10, %v1231_v24 }
 0xcef   :  { %v2436_v27 = vpop.f32.mrf.mxu1  ;;  %v2452_v29 = vpop.f32.mrf.mxu0 }
 0xcf0   :  { %v1253_v23 = vmul.f32 %v1232_v14, %v2961_v20 }
 0xcf1   :  { %v1234_v30 = vpop.f32.mrf.mxu1  ;;  %v1317_v31 = vpop.f32.mrf.mxu0 }
 0xcf2   :  { %v1318_v0 = vadd.f32 %v2151_v40, %v1317_v31  ;;  %v1235_v51 = vadd.f32 %v2141_v10, %v1234_v30 }
 0xcf3   :  { %v2437_v1 = vpop.f32.mrf.mxu1  ;;  %v2453_v32 = vpop.f32.mrf.mxu0 }
 0xcf4   :  { %v1422_v8 = vpack.c.bf16 %v1318_v0, %v1315_v4  ;;  %v1254_v17 = vmul.f32 %v1235_v51, %v2954_v15 }
 0xcf5   :  { %v1239_v33 = vpop.f32.mrf.mxu1  ;;  %v1322_v34 = vpop.f32.mrf.mxu0 }
 0xcf6   :  { %v1323_v59 = vadd.f32 %v2151_v40, %v1322_v34  ;;  %v1435_v16 = vsel %vm191_vm1, %v1422_v8, 0  ;;  %v1419_v30 = vpack.c.bf16 %v1254_v17, %v1253_v23  ;;  %v1240_v34 = vadd.f32 %v2141_v10, %v1239_v33 }
 0xcf7   :  { %v2440_v6 = vpop.f32.mrf.mxu1  ;;  %v2456_v35 = vpop.f32.mrf.mxu0 }
 0xcf8   :  { %v1255_v33 = vmul.f32 %v1240_v34, %v2948_v9 }
 0xcf9   :  { %v1242_v36 = vpop.f32.mrf.mxu1  ;;  %v1325_v37 = vpop.f32.mrf.mxu0 }
 0xcfa   :  { %v1326_v53 = vadd.f32 %v2151_v40, %v1325_v37  ;;  %v1243_v24 = vadd.f32 %v2141_v10, %v1242_v36 }
 0xcfb   :  { %v2441_v38 = vpop.f32.mrf.mxu1  ;;  %v2457_v39 = vpop.f32.mrf.mxu0 }
 0xcfc   :  { %v1423_v63 = vpack.c.bf16 %v1326_v53, %v1323_v59  ;;  %v1256_v39 = vmul.f32 %v1243_v24, %v2942_v3 }
 0xcfd   :  { %v3216_v42 = vpop.f32.mrf.mxu1  ;;  %v1330_v43 = vpop.f32.mrf.mxu0 }
 0xcfe   :  { %v1331_v44 = vadd.f32 %v2151_v40, %v1330_v43  ;;  %v1438_v54 = vsel %vm191_vm1, %v1423_v63, 0 }
 0xcff   :  { %v2444_v46 = vpop.f32.mrf.mxu1  ;;  %v2460_v47 = vpop.f32.mrf.mxu0 }
 0xd00   :  { %v1424_v48 = vpack.c.bf16 %v1331_v44, %v1331_v44  ;;  %v1420_v47 = vpack.c.bf16 %v1256_v39, %v1255_v33 }
 0xd01   :  { %v1250_v50 = vpop.f32.mrf.mxu1  ;;  %v1333_v52 = vpop.f32.mrf.mxu0 }
 0xd02   :  { %v1441_v56 = vsel %vm191_vm1, %v1424_v48, 0  ;;  %v1248_v48 = vadd.f32 %v2141_v10, %v3216_v42 }
 0xd03   :  { %v2445_v57 = vpop.f32.mrf.mxu1  ;;  %v2461_v58 = vpop.f32.mrf.mxu0  ;;  %2479 = vmatpush3.bf16.xpose.msra.mxu0 %v1441_v56 }
 0xd04   :  { %2480 = vmatprep.subr.bf16.mxu0 %v2713_v5 }
 0xd05   :  { %v1392_v62 = vpop.f32.mrf.mxu1 }
 0xd06   :  { %v1393_v36 = vadd.f32 %v2161_v18, %v1392_v62 }
 0xd07   :  { %v2468_v41 = vpop.f32.mrf.mxu1 }
 0xd08   :  { %v1414_v50 = vmul.f32 %v1393_v36, %v2961_v20 }
 0xd09   :  { %v1395_v45 = vpop.f32.mrf.mxu1 }
 0xd0a   :  { %v1396_v35 = vadd.f32 %v2161_v18, %v1395_v45 }
 0xd0b   :  { %v2469_v49 = vpop.f32.mrf.mxu1  ;;  %2481 = vmatpush3.bf16.xpose.msra.mxu0 %v1438_v54 }
 0xd0c   :  { %2482 = vmatprep.subr.bf16.mxu0 %v2713_v5  ;;  %v1415_v44 = vmul.f32 %v1396_v35, %v2954_v15 }
 0xd0d   :  { %v1400_v61 = vpop.f32.mrf.mxu1 }
 0xd0e   :  { %v1401_v1 = vadd.f32 %v2161_v18, %v1400_v61 }
 0xd0f   :  { %v2472_v11 = vpop.f32.mrf.mxu1 }
 0xd10   :  { %v1416_v43 = vmul.f32 %v1401_v1, %v2948_v9  ;;  %v1257_v9 = vmul.f32 %v1248_v48, %v2935_v60 }
 0xd11   :  { %v1403_v12 = vpop.f32.mrf.mxu1 }
 0xd12   :  { %v1404_v27 = vadd.f32 %v2161_v18, %v1403_v12  ;;  %v1421_v15 = vpack.c.bf16 %v1257_v9, %v1257_v9 }
 0xd13   :  { %v2473_v55 = vpop.f32.mrf.mxu1  ;;  %2483 = vmatpush3.bf16.xpose.msra.mxu0 %v1435_v16 }
 0xd14   :  { %2530 = vmatprep.subr.bf16.mxu0 %v2713_v5  ;;  %v1417_v37 = vmul.f32 %v1404_v27, %v2942_v3  ;;  %v1557_v3 = vpack.c.bf16 %v1415_v44, %v1414_v50 }
 0xd15   :  { %v1408_v21 = vpop.f32.mrf.mxu1 }
 0xd16   :  { %v1409_v26 = vadd.f32 %v2161_v18, %v1408_v21  ;;  %v1558_v46 = vpack.c.bf16 %v1417_v37, %v1416_v43 }
 0xd17   :  { %v2476_v29 = vpop.f32.mrf.mxu1 }
 0xd18   :  { %v1418_v31 = vmul.f32 %v1409_v26, %v2935_v60 }
 0xd19   :  { %v1411_v32 = vpop.f32.mrf.mxu1 }
 0xd1a   :  { %v1559_v6 = vpack.c.bf16 %v1418_v31, %v1418_v31  ;;  %2485 = vmatmul.mubr.msk.bf16.vlgmr.msra.gmra.mxu0 %vm191_vm1, %v1419_v30 }
 0xd1b   :  { %v2477_v38 = vpop.f32.mrf.mxu1  ;;  %2488 = vmatprep.mubr.msk.bf16.mxu0 %vm2714_vm3, %v2713_v5 }
 0xd1c   :  { %v1570_v40 = vsel %vm290_vm5, %v1559_v6, 0 }
 0xd1d   :  { %2497 = vmatpush3.bf16.msra.mxu1 %v1570_v40 }
 0xd1e   :  { %2498 = vmatprep.subr.bf16.mxu1 %v2713_v5 }
 0xd21   :  { %2499 = vmatpush3.bf16.msra.mxu1 %v1558_v46 }
 0xd22   :  { %2489 = vmatmul.mubr.msk.bf16.gmra.mxu0 %vm191_vm1, %v1420_v47  ;;  %2500 = vmatprep.subr.bf16.mxu1 %v2713_v5 }
 0xd23   :  { %2492 = vmatprep.mubr.msk.bf16.mxu0 %vm2714_vm3, %v2713_v5 }
 0xd25   :  { %2501 = vmatpush3.bf16.msra.mxu1 %v1557_v3 }
 0xd26   :  { %2514 = vmatprep.subr.bf16.mxu1 %v2713_v5 }
 0xd2a   :  { %2493 = vmatmul.mubr.msk.bf16.gmra.mxu0 %vm191_vm1, %v1421_v15 }
 0xd2b   :  { %2546 = vmatprep.mubr.msk.bf16.mxu0 %vm2714_vm3, %v2713_v5 }
 0xdda   :  { %v1477_v20 = vpop.f32.mrf.mxu0 }
 0xddb   :  { %v1478_v42 = vadd.f32 %v1477_v20, %v3002_v2 }
 0xddc   :  { %v2486_v52 = vpop.f32.mrf.mxu0 }
 0xddd   :  { %v1499_v53 = vsel %vm640_vm7, %v1478_v42, -inf }
 0xdde   :  { %1500 = vmax.xlane.f32.xlu0 %v1499_v53  ;;  %v1480_v56 = vpop.f32.mrf.mxu0 }
 0xddf   :  { %v1481_v57 = vadd.f32 %v1480_v56, %v3008_v7  ;;  %v2598_v56 = vld [vmem:[%s3386_s7 + $0x78] sm:$0xff]  }
 0xde0   :  { %v2487_v60 = vpop.f32.mrf.mxu0 }
 0xde1   :  { %v1502_v58 = vsel %vm640_vm7, %v1481_v57, -inf }
 0xde2   :  { %1503 = vmax.xlane.f32.xlu1 %v1502_v58  ;;  %v1485_v59 = vpop.f32.mrf.mxu0 }
 0xde3   :  { %v1486_v62 = vadd.f32 %v1485_v59, %v3015_v13 }
 0xde4   :  { %v2490_v63 = vpop.f32.mrf.mxu0 }
 0xde5   :  { %v1505_v41 = vsel %vm640_vm7, %v1486_v62, -inf }
 0xde6   :  { %1506 = vmax.xlane.f32.xlu0 %v1505_v41  ;;  %v1488_v45 = vpop.f32.mrf.mxu0 }
 0xde7   :  { %v1489_v2 = vadd.f32 %v1488_v45, %v3022_v19 }
 0xde8   :  { %v2491_v0 = vpop.f32.mrf.mxu0 }
 0xde9   :  { %v1508_v54 = vsel %vm640_vm7, %v1489_v2, -inf }
 0xdea   :  { %1509 = vmax.xlane.f32.xlu1 %v1508_v54  ;;  %v1493_v49 = vpop.f32.mrf.mxu0 }
 0xdeb   :  { %v1494_v7 = vadd.f32 %v1493_v49, %v3029_v25 }
 0xdec   :  { %v2494_v4 = vpop.f32.mrf.mxu0 }
 0xded   :  { %v1511_v61 = vsel %vm640_vm7, %v1494_v7, -inf }
 0xdee   :  { %1512 = vmax.xlane.f32.xlu0 %v1511_v61  ;;  %v1496_v8 = vpop.f32.mrf.mxu0 }
 0xdf0   :  { %v2495_v13 = vpop.f32.mrf.mxu0 }
 0xe67   :  { %v1501_v10 = vpop.xlane.xlu0 %1500 }
 0xe68   :  { %v1514_v11 = vsub.f32 %v1478_v42, %v1501_v10 }
 0xe6a   :  { %v1519_v51 = vmul.f32 1.442695, %v1514_v11 }
 0xe6b   :  { %v1504_v12 = vpop.xlane.xlu1 %1503 }
 0xe6c   :  { %2656 = vpow2.f32 %v1519_v51  ;;  %v1515_v14 = vsub.f32 %v1481_v57, %v1504_v12  ;;  %v2599_v57 = vld [vmem:[%s3386_s7 + $0x70] sm:$0xff]  }
 0xe6e   :  { %v1521_v19 = vmul.f32 1.442695, %v1515_v14 }
 0xe6f   :  { %v1507_v16 = vpop.xlane.xlu0 %1506 }
 0xe70   :  { %2658 = vpow2.f32 %v1521_v19  ;;  %v1516_v55 = vsub.f32 %v1486_v62, %v1507_v16 }
 0xe72   :  { %v1523_v17 = vmul.f32 1.442695, %v1516_v55 }
 0xe73   :  { %v1510_v18 = vpop.xlane.xlu1 %1509 }
 0xe74   :  { %2660 = vpow2.f32 %v1523_v17  ;;  %v1517_v25 = vsub.f32 %v1489_v2, %v1510_v18 }
 0xe76   :  { %v1525_v21 = vmul.f32 1.442695, %v1517_v25 }
 0xe77   :  { %v1513_v23 = vpop.xlane.xlu0 %1512 }
 0xe78   :  { %2662 = vpow2.f32 %v1525_v21  ;;  %v1518_v26 = vsub.f32 %v1494_v7, %v1513_v23 }
 0xe79   :  { %v2657_v27 = vpop.eup %2656 }
 0xe7a   :  { %v1527_v29 = vmul.f32 1.442695, %v1518_v26  ;;  %v1529_v30 = vsel %vm640_vm7, %v2657_v27, 0.0  ;;  %v2180_v26 = vld [vmem:[%s3382_s3 + $0x12] ss:$0 sm:$0xff] }
 0xe7b   :  { %1530 = vadd.xlane.f32.xlu1 %v1529_v30 }
 0xe7c   :  { %2664 = vpow2.f32 %v1527_v29 }
 0xe7d   :  { %v2659_v24 = vpop.eup %2658 }
 0xe7e   :  { %v1532_v31 = vsel %vm640_vm7, %v2659_v24, 0.0 }
 0xe7f   :  { %1533 = vadd.xlane.f32.xlu0 %v1532_v31 }
 0xe81   :  { %v2661_v1 = vpop.eup %2660 }
 0xe82   :  { %v1535_v32 = vsel %vm640_vm7, %v2661_v1, 0.0 }
 0xe83   :  { %1536 = vadd.xlane.f32.xlu1 %v1535_v32 }
 0xe85   :  { %v2663_v34 = vpop.eup %2662 }
 0xe86   :  { %v1538_v6 = vsel %vm640_vm7, %v2663_v34, 0.0 }
 0xe87   :  { %1539 = vadd.xlane.f32.xlu0 %v1538_v6 }
 0xe89   :  { %v2665_v35 = vpop.eup %2664 }
 0xe8a   :  { %v1541_v37 = vsel %vm640_vm7, %v2665_v35, 0.0 }
 0xe8b   :  { %1542 = vadd.xlane.f32.xlu1 %v1541_v37 }
 0xf04   :  { %v1531_v38 = vpop.xlane.xlu1 %1530 }
 0xf05   :  { %2666 = vrcp.f32 %v1531_v38 }
 0xf08   :  { %v1534_v39 = vpop.xlane.xlu0 %1533 }
 0xf09   :  { %2668 = vrcp.f32 %v1534_v39 }
 0xf0c   :  { %v1537_v40 = vpop.xlane.xlu1 %1536 }
 0xf0d   :  { %2670 = vrcp.f32 %v1537_v40 }
 0xf10   :  { %v1540_v36 = vpop.xlane.xlu0 %1539 }
 0xf11   :  { %2672 = vrcp.f32 %v1540_v36 }
 0xf12   :  { %v2667_v43 = vpop.eup %2666 }
 0xf13   :  { %v1549_v46 = vmul.f32 %v2667_v43, %v2657_v27 }
 0xf14   :  { %v1543_v33 = vpop.xlane.xlu1 %1542 }
 0xf15   :  { %2674 = vrcp.f32 %v1543_v33 }
 0xf16   :  { %v2669_v44 = vpop.eup %2668 }
 0xf17   :  { %v1550_v47 = vmul.f32 %v2669_v44, %v2659_v24  ;;  %v2600_v44 = vld [vmem:[%s3387_s8 + $0x18] sm:$0xff]  }
 0xf19   :  { %v1554_v48 = vpack.c.bf16 %v1550_v47, %v1549_v46  ;;  %v2601_v46 = vld [vmem:[%s3387_s8 + $0x10] sm:$0xff]  }
 0xf1a   :  { %v2671_v50 = vpop.eup %2670 }
 0xf1b   :  { %2503 = vmatmul.mubr.msk.bf16.vlgmr.msra.gmra.mxu1 %vm640_vm7, %v1554_v48  ;;  %v1551_v9 = vmul.f32 %v2671_v50, %v2661_v1 }
 0xf1c   :  { %2506 = vmatprep.mubr.msk.bf16.mxu1 %vm2714_vm3, %v2713_v5  ;;  %2515 = vmatpush3.bf16.msra.mxu1 %v2598_v56 }
 0xf1d   :  { %2516 = vmatprep.subr.bf16.mxu1 %v2713_v5 }
 0xf1e   :  { %v2673_v3 = vpop.eup %2672 }
 0xf1f   :  { %v1552_v15 = vmul.f32 %v2673_v3, %v2663_v34 }
 0xf20   :  { %2517 = vmatpush3.bf16.msra.mxu1 %v2599_v57 }
 0xf21   :  { %v1555_v20 = vpack.c.bf16 %v1552_v15, %v1551_v9  ;;  %2522 = vmatprep.subr.bf16.mxu1 %v2713_v5 }
 0xf22   :  { %v2675_v42 = vpop.eup %2674 }
 0xf23   :  { %2507 = vmatmul.mubr.msk.bf16.gmra.mxu1 %vm640_vm7, %v1555_v20  ;;  %v1553_v52 = vmul.f32 %v2675_v42, %v2665_v35 }
 0xf24   :  { %2510 = vmatprep.mubr.msk.bf16.mxu1 %vm2714_vm3, %v2713_v5 }
 0xf25   :  { %v1556_v53 = vpack.c.bf16 %v1553_v52, %v1553_v52  ;;  %v2181_v52 = vld [vmem:[%s3382_s3 + $0x13] ss:$0 sm:$0xff] }
 0xf2b   :  { %2511 = vmatmul.mubr.msk.bf16.gmra.mxu1 %vm640_vm7, %v1556_v53 }
 0xf2c   :  { %2518 = vmatprep.mubr.msk.bf16.mxu1 %vm2714_vm3, %v2713_v5 }
 0xfdb   :  { %v1606_v60 = vpop.f32.mrf.mxu1 }
 0xfdd   :  { %v2504_v58 = vpop.f32.mrf.mxu1 }
 0xfdf   :  { %v1609_v59 = vpop.f32.mrf.mxu1 }
 0xfe0   :  { %v1630_v2 = vrot.slane %v1609_v59, 2 }
 0xfe1   :  { %v2505_v62 = vpop.f32.mrf.mxu1 }
 0xfe3   :  { %v1614_v63 = vpop.f32.mrf.mxu1 }
 0xfe4   :  { %v1631_v41 = vrot.slane %v1614_v63, 2  ;;  %v1638_v49 = vrot.slane %v1614_v63, 4 }
 0xfe5   :  { %v2508_v45 = vpop.f32.mrf.mxu1 }
 0xfe6   :  { %v1632_v54 = vsel %vm296_vm6, %v1630_v2, %v1631_v41  ;;  %v1636_v61 = vadd.f32 %v1631_v41, %v1609_v59  ;;  %v2602_v41 = vld [vmem:[%s3388_s9 + $0x78] sm:$0xff]   ;;  %v2603_v45 = vld [vmem:[%s3388_s9 + $0x70] sm:$0xff]   ;;  %v2604_v2 = vld [vmem:[%s3388_s9 + $0x68] sm:$0xff]  }
 0xfe7   :  { %v1617_v0 = vpop.f32.mrf.mxu1  ;;  %v1635_v13 = vadd.f32 %v1632_v54, %v1606_v60  ;;  %v2182_v60 = vld [vmem:[%s3382_s3 + $0x14] ss:$0 sm:$0xff]  ;;  %2531 = vmatpush3.bf16.msra.mxu0 %v2602_v41  ;;  %v2606_v54 = vld [vmem:[%s3388_s9 + $0x58] sm:$0xff]  }
 0xfe8   :  { %v1639_v7 = vrot.slane %v1617_v0, 4  ;;  %v1646_v51 = vrot.slane %v1617_v0, 6  ;;  %2532 = vmatprep.subr.bf16.mxu0 %v2713_v5  ;;  %v2605_v0 = vld [vmem:[%s3388_s9 + $0x60] sm:$0xff]  }
 0xfe9   :  { %v2509_v4 = vpop.f32.mrf.mxu1 }
 0xfea   :  { %v1640_v8 = vsel %vm290_vm5, %v1638_v49, %v1639_v7  ;;  %v1644_v11 = vadd.f32 %v1639_v7, %v1636_v61  ;;  %v2607_v49 = vld [vmem:[%s3388_s9 + $0x50] sm:$0xff]   ;;  %v2608_v7 = vld [vmem:[%s3388_s9 + $0x48] sm:$0xff]   ;;  %v2609_v4 = vld [vmem:[%s3388_s9 + $0x40] sm:$0xff]  }
 0xfeb   :  { %v1622_v10 = vpop.f32.mrf.mxu1  ;;  %v1643_v14 = vadd.f32 %v1640_v8, %v1635_v13  ;;  %2533 = vmatpush3.bf16.msra.mxu0 %v2603_v45  ;;  %v2187_v61 = vld [vmem:[%s3383_s4 + $0x1] ss:$0 sm:$0xff] }
 0xfec   :  { %v1647_v12 = vrot.slane %v1622_v10, 6  ;;  %2534 = vmatprep.subr.bf16.mxu0 %v2713_v5 }
 0xfed   :  { %v2512_v19 = vpop.f32.mrf.mxu1 }
 0xfee   :  { %v1648_v16 = vsel %vm284_vm4, %v1646_v51, %v1647_v12  ;;  %v1652_v55 = vadd.f32 %v1647_v12, %v1644_v11 }
 0xfef   :  { %v1651_v17 = vadd.f32 %v1648_v16, %v1643_v14  ;;  %v1625_v18 = vpop.f32.mrf.mxu1  ;;  %2535 = vmatpush3.bf16.msra.mxu0 %v2604_v2 }
 0xff0   :  { %2536 = vmatprep.subr.bf16.mxu0 %v2713_v5 }
 0xff1   :  { %v1653_v25 = vpack.c.bf16 %v1652_v55, %v1651_v17  ;;  %v2513_v21 = vpop.f32.mrf.mxu1 }
 0xff3   :  { %2519 = vmatmul.mubr.msk.bf16.vlgmr.msra.gmra.mxu1 %vm191_vm1, %v1653_v25  ;;  %2537 = vmatpush3.bf16.msra.mxu0 %v2605_v0 }
 0xff4   :  { %2526 = vmatprep.mubr.msk.bf16.mxu1 %vm2714_vm3, %v2713_v5  ;;  %2523 = vmatpush3.bf16.msra.mxu1 %v2600_v44 }
 0xff5   :  { %2524 = vmatprep.subr.bf16.mxu1 %v2713_v5  ;;  %2538 = vmatprep.subr.bf16.mxu0 %v2713_v5 }
 0xff7   :  { %2539 = vmatpush3.bf16.msra.mxu0 %v2606_v54 }
 0xff8   :  { %2525 = vmatpush3.bf16.msra.mxu1 %v2601_v46  ;;  %2540 = vmatprep.subr.bf16.mxu0 %v2713_v5 }
 0xff9   :  { %2550 = vmatprep.subr.bf16.mxu1 %v2713_v5 }
 0xffb   :  { %2541 = vmatpush3.bf16.msra.mxu0 %v2607_v49 }
 0xffc   :  { %2542 = vmatprep.subr.bf16.mxu0 %v2713_v5 }
 0xfff   :  { %2543 = vmatpush3.bf16.msra.mxu0 %v2608_v7 }
0x1000   :  { %2544 = vmatprep.subr.bf16.mxu0 %v2713_v5 }
0x1003   :  { %2545 = vmatpush3.bf16.msra.mxu0 %v2609_v4 }
0x10b3   :  { %v1708_v23 = vpop.f32.mrf.mxu1 }
0x10b4   :  { %v1715_v27 = vadd.f32 %v1708_v23, %v3137_v22 }
0x10b5   :  { %v2520_v29 = vpop.f32.mrf.mxu1 }
0x10b6   :  { %v3296_v30 = vadd.f32 %v2180_v26, %v1715_v27 }
0x10b7   :  { %v1711_v24 = vpop.f32.mrf.mxu1 }
0x10b8   :  { %v1716_v31 = vadd.f32 %v1711_v24, %v3142_v28  ;;  %v1726_v1 = vsel %vm191_vm1, %v3296_v30, 0.0 }
0x10b9   :  { %1727 = vadd.xlane.f32.xlu0 %v1726_v1  ;;  %v2521_v32 = vpop.f32.mrf.mxu1  ;;  %v2217_v1 = vld [vmem:[%s3382_s3 + $0x15] ss:$0 sm:$0xff] }
0x10ba   :  { %v1723_v34 = vadd.f32 %v2180_v26, %v1716_v31 }
0x10bc   :  { %v1729_v6 = vsel %vm195_vm2, %v1723_v34, 0.0 }
0x10bd   :  { %1730 = vadd.xlane.f32.xlu1 %v1729_v6 }
0x1142   :  { %v1728_v35 = vpop.xlane.xlu0 %1727 }
0x1143   :  { %v1732_v37 = vmul.f32 0.03125, %v1728_v35 }
0x1145   :  { %v1734_v38 = vsub.f32 %v3296_v30, %v1732_v37 }
0x1146   :  { %v1731_v22 = vpop.xlane.xlu1 %1730 }
0x1147   :  { %v1733_v39 = vmul.f32 0.03125, %v1731_v22  ;;  %v1736_v40 = vmul.f32 %v1734_v38, %v1734_v38 }
0x1149   :  { %v1735_v36 = vsub.f32 %v1723_v34, %v1733_v39  ;;  %v1738_v43 = vsel %vm191_vm1, %v1736_v40, 0.0 }
0x114a   :  { %1739 = vadd.xlane.f32.xlu0 %v1738_v43 }
0x114b   :  { %v1737_v28 = vmul.f32 %v1735_v36, %v1735_v36 }
0x114d   :  { %v1741_v33 = vsel %vm195_vm2, %v1737_v28, 0.0  ;;  %v2610_v28 = vld [vmem:[%s3389_s10 + $0x8] sm:$0xff]  }
0x114e   :  { %1742 = vadd.xlane.f32.xlu1 %v1741_v33 }
0x11d3   :  { %v1740_v47 = vpop.xlane.xlu0 %1739 }
0x11d4   :  { %v1744_v48 = vmul.f32 0.03125, %v1740_v47 }
0x11d6   :  { %v1746_v50 = vadd.f32 1e-05, %v1744_v48  ;;  %v2218_v48 = vld [vmem:[%s3382_s3 + $0x2] ss:$0 sm:$0xff] }
0x11d7   :  { %v1743_v3 = vpop.xlane.xlu1 %1742 }
0x11d8   :  { %2676 = vrsqrt.f32 %v1746_v50  ;;  %v1745_v9 = vmul.f32 0.03125, %v1743_v3  ;;  %v2219_v3 = vld [vmem:[%s3382_s3 + $0x3] ss:$0 sm:$0xff] }
0x11da   :  { %v1747_v15 = vadd.f32 1e-05, %v1745_v9 }
0x11dc   :  { %2678 = vrsqrt.f32 %v1747_v15 }
0x11e5   :  { %v2677_v20 = vpop.eup %2676 }
0x11e6   :  { %v1750_v42 = vmul.f32 %v2677_v20, %v1734_v38 }
0x11e8   :  { %v1756_v57 = vmul.f32 %v2181_v52, %v1750_v42 }
0x11e9   :  { %v2679_v53 = vpop.eup %2678 }
0x11ea   :  { %v1751_v56 = vmul.f32 %v2679_v53, %v1735_v36  ;;  %v1762_v59 = vadd.f32 %v2182_v60, %v1756_v57 }
0x11ec   :  { %v1757_v58 = vmul.f32 %v2181_v52, %v1751_v56 }
0x11ee   :  { %v1763_v62 = vadd.f32 %v2182_v60, %v1757_v58 }
0x11f0   :  { %v1764_v63 = vpack.c.bf16 %v1763_v62, %v1762_v59 }
0x11f2   :  { %2527 = vmatmul.mubr.msk.bf16.vlgmr.msra.gmra.mxu1 %vm191_vm1, %v1764_v63 }
0x11f3   :  { %2554 = vmatprep.mubr.msk.bf16.mxu1 %vm2714_vm3, %v2713_v5  ;;  %2551 = vmatpush3.bf16.msra.mxu1 %v2610_v28 }
0x11f4   :  { %2552 = vmatprep.subr.bf16.mxu1 %v2713_v5 }
0x12b2   :  { %v1824_v8 = vpop.f32.mrf.mxu1 }
0x12b3   :  { %v1825_v13 = vadd.f32 %v2187_v61, %v1824_v8 }
0x12b4   :  { %v2528_v10 = vpop.f32.mrf.mxu1 }
0x12b5   :  { %v2191_v11 = vmul.f32 -1.702, %v1825_v13 }
0x12b6   :  { %v1827_v51 = vpop.f32.mrf.mxu1 }
0x12b7   :  { %v1835_v12 = vmul.f32 1.442695, %v2191_v11  ;;  %v1828_v14 = vadd.f32 %v2187_v61, %v1827_v51 }
0x12b8   :  { %v2529_v19 = vpop.f32.mrf.mxu1 }
0x12b9   :  { %2680 = vpow2.f32 %v1835_v12  ;;  %v2192_v16 = vmul.f32 -1.702, %v1828_v14 }
0x12bb   :  { %v1837_v55 = vmul.f32 1.442695, %v2192_v16 }
0x12bd   :  { %2682 = vpow2.f32 %v1837_v55 }
0x12c6   :  { %v2681_v17 = vpop.eup %2680 }
0x12c7   :  { %v1839_v18 = vadd.f32 1.0, %v2681_v17 }
0x12c9   :  { %2684 = vrcp.f32 %v1839_v18 }
0x12ca   :  { %v2683_v25 = vpop.eup %2682 }
0x12cb   :  { %v1840_v21 = vadd.f32 1.0, %v2683_v25 }
0x12cd   :  { %2686 = vrcp.f32 %v1840_v21 }
0x12d6   :  { %v2685_v23 = vpop.eup %2684 }
0x12d7   :  { %v1845_v27 = vmul.f32 %v2685_v23, %v1825_v13 }
0x12da   :  { %v2687_v26 = vpop.eup %2686 }
0x12db   :  { %v1846_v29 = vmul.f32 %v2687_v26, %v1828_v14 }
0x12dd   :  { %v1847_v24 = vpack.c.bf16 %v1846_v29, %v1845_v27 }
0x12df   :  { %2547 = vmatmul.mubr.bf16.vlgmr.msra.gmra.mxu0 %v1847_v24 }
0x139f   :  { %v1947_v31 = vpop.f32.mrf.mxu0 }
0x13a0   :  { %v1953_v32 = vadd.f32 %v1947_v31, %v3296_v30  ;;  %v2611_v30 = vld [vmem:[%s3389_s10] sm:$0xff]   ;;  %s2715_s10 = smov [#allocation2]  }
0x13a1   :  { %v2548_v34 = vpop.f32.mrf.mxu0  ;;  %2553 = vmatpush3.bf16.msra.mxu1 %v2611_v30  ;;  %s2053_s12 = sshll.u32 %s2715_s10, 4  ;;  %s2054_s12 = int_to_ptr.vmem [resolvable:$true] %s2053_s12 }
0x13a2   :  { %v1959_v6 = vadd.f32 %v2217_v1, %v1953_v32  ;;  %s2690_s1 = scalar_lea.vmem %s2054_s12, 32  ;;  %p2695_p1 = scmp.lt.s32.totalorder %s2054_s12, %s2054_s12 }
0x13a3   :  { %v1950_v35 = vpop.f32.mrf.mxu0  ;;  %p2691_p0 = scmp.ne.s32.totalorder %s2054_s12, %s2690_s1  ;;  %p2696_p2 = scmp.lt.s32.totalorder %s2690_s1, %s2690_s1 }
0x13a4   :  { %v1962_v37 = vsel %vm195_vm2, %v1959_v6, 0.0 }
0x13a5   :  { %1963 = vadd.xlane.f32.xlu0 %v1962_v37  ;;  %v2549_v38 = vpop.f32.mrf.mxu0  ;;  %p2697_p3 = por %p2696_p2, %p2695_p1 }
0x13a7   :  { %p2698_p4 = pnand %p2697_p3, %p2691_p0 }
0x142e   :  { %v1964_v22 = vpop.xlane.xlu0 %1963 }
0x142f   :  { %v1965_v39 = vmul.f32 0.03125, %v1964_v22 }
0x1431   :  { %v1966_v40 = vsub.f32 %v1959_v6, %v1965_v39 }
0x1433   :  { %v1967_v36 = vmul.f32 %v1966_v40, %v1966_v40 }
0x1435   :  { %v1968_v43 = vsel %vm195_vm2, %v1967_v36, 0.0 }
0x1436   :  { %1969 = vadd.xlane.f32.xlu1 %v1968_v43 }
0x14bf   :  { %v1970_v33 = vpop.xlane.xlu1 %1969 }
0x14c0   :  { %v1971_v44 = vmul.f32 0.03125, %v1970_v33 }
0x14c2   :  { %v1972_v46 = vadd.f32 1e-05, %v1971_v44 }
0x14c4   :  { %2688 = vrsqrt.f32 %v1972_v46 }
0x14d1   :  { %v2689_v47 = vpop.eup %2688 }
0x14d2   :  { %v1974_v50 = vmul.f32 %v2689_v47, %v1966_v40 }
0x14d4   :  { %v1979_v9 = vmul.f32 %v2218_v48, %v1974_v50 }
0x14d6   :  { %v1984_v15 = vadd.f32 %v2219_v3, %v1979_v9 }
0x14d8   :  { %v1985_v20 = vpack.c.bf16 %v1984_v15, %v1984_v15 }
0x14da   :  { %2555 = vmatmul.mubr.msk.bf16.vlgmr.msra.gmra.mxu1 %vm191_vm1, %v1985_v20 }
0x159a   :  { %v2039_v5 = vpop.f32.mrf.mxu1 }
0x159b   :  { %2046 = vst.msk [vmem:[#allocation2] sm:$0x3] %vm2045_vm8, %v2039_v5 }
0x159c   :  { %v2556_v42 = vpop.f32.mrf.mxu1 }
0x159d   :  { %2701 = shalt.err (!%p2698_p4)
}
0x159e   :  { %2056 = dma.vmem_to_hbm [thread:$0]  %s2054_s12, 32, %s3390_s11, [#allocation3]   ;;  %v2042_v52 = vpop.f32.mrf.mxu1 }
0x15a0   :  { %v2557_v53 = vpop.f32.mrf.mxu1 }
0x15a1   :  { %2710 = dma.done.wait [#allocation3], 32  }
0x15a2   :  { %2711 = vsyncadd [#allocation3], 4294967264 }
0x15a3   :  { %2060 = vsyncpa [#allocation3], 1 }

</bundles_post_ra>
